<compile_context>
chip_gen: v5e
topology: v5e:2x2
jax: 0.10.0
libtpu: 0.0.40
codegen_flags: <defaults>
</compile_context>

<pallas_src>
import functools

import jax
import jax.numpy as jnp
from jax.experimental import pallas as pl
from jax.experimental.pallas import tpu as pltpu


def _round_up(x, m):
    return ((x + m - 1) // m) * m


def _bf16_vpu_default():
    """bf16 VALU/EUP exists on v6e/v7x; keep f32 on v4/v5 (no bf16 VPU)."""
    try:
        kind = jax.devices()[0].device_kind.lower()
    except Exception:
        return False
    return ("v6" in kind) or ("v7" in kind)


def _dbdh_kernel(u_row_ref, u_col_ref, lab_row_ref, lab_col_ref,
                 lik_ref, quant_ref, *, n_valid, n_pad_cols, tn, pow_,
                 mxu_bf16, elem_bf16):
    j = pl.program_id(1)

    # Clamp in f32 (matches u.clamp(-1, 1)).
    u_row = jnp.clip(u_row_ref[...].astype(jnp.float32), -1.0, 1.0)  # (tm, nbit)
    u_col = jnp.clip(u_col_ref[...].astype(jnp.float32), -1.0, 1.0)  # (tn, nbit)

    # dot = 0.5 * u_row @ u_col.T  -- 0.5 folded into the small row operand,
    # contracting dims (1, 1) so no explicit transpose; f32 accumulation.
    lhs = 0.5 * u_row
    rhs = u_col
    if mxu_bf16:
        lhs = lhs.astype(jnp.bfloat16)
        rhs = rhs.astype(jnp.bfloat16)
    dot = jax.lax.dot_general(
        lhs, rhs,
        dimension_numbers=(((1,), (1,)), ((), ())),
        preferred_element_type=jnp.float32)                          # (tm, tn) f32

    # Elementwise softplus chain: bf16 on v6e/v7x halves vld/vst + VALU/EUP
    # issue count on the dominant phase; f32 elsewhere.
    elem_dtype = jnp.bfloat16 if elem_bf16 else jnp.float32
    d = dot.astype(elem_dtype)

    # Similarity from integer labels (y is one-hot): sim[i, j] = (l_i == l_j).
    same = lab_row_ref[...] == lab_col_ref[...]                      # (tm,1)==(1,tn) -> (tm,tn)

    # softplus(dot) - sim*dot  ==  softplus(where(sim, -dot, dot))
    z = jnp.where(same, -d, d)
    lik_tile = (jnp.log1p(jnp.exp(-jnp.abs(z)))
                + jnp.maximum(z, jnp.zeros((), elem_dtype)))         # (tm, tn)

    # Row-sum over this column block as an MXU matvec against a (tn, 1) weight
    # vector.  The weights also zero out padded columns (only the last column
    # block has any), so masking costs one tiny (tn, 1) op instead of the old
    # full (tm, tn) iota/compare/where pass, and the reduction runs on the
    # (nearly idle) MXU instead of the XLU.
    if n_pad_cols != n_valid:
        col_ids = j * tn + jax.lax.broadcasted_iota(jnp.int32, (tn, 1), 0)
        w = (col_ids < n_valid).astype(elem_dtype)
    else:
        w = jnp.ones((tn, 1), elem_dtype)
    row_partial = jax.lax.dot_general(
        lik_tile, w,
        dimension_numbers=(((1,), (0,)), ((), ())),
        preferred_element_type=jnp.float32)                          # (tm, 1) f32

    @pl.when(j == 0)
    def _():
        lik_ref[...] = row_partial
        # Quantization term: once per row block (not per column block), f32.
        u_mean = jnp.mean(u_row, axis=1, keepdims=True)              # (tm, 1)
        if pow_ == 1:
            quant_ref[...] = jnp.abs(u_mean)
        else:
            # Module squares for any pow != 1 (hard-coded .pow(2) in the else).
            quant_ref[...] = u_mean * u_mean

    @pl.when(j > 0)
    def _():
        lik_ref[...] = lik_ref[...] + row_partial


def dbdh_loss(u, y, *, alpha=1.0, pow_=2, tile_m=256, tile_n=512,
              mxu_bf16=False, elem_bf16=None):
    """Pallas TPU implementation of DBDHLoss.forward (ind=None path).

    Assumes y is a one-hot label matrix (as the module's docstring states),
    so sim = (y @ y.T > 0) reduces to a label-equality compare.
    """
    assert u.ndim == 2 and y.ndim == 2 and u.shape[0] == y.shape[0]
    assert tile_m % 128 == 0 and tile_n % 128 == 0, "tiles must be multiples of 128"
    n, nbit = u.shape

    if elem_bf16 is None:
        elem_bf16 = _bf16_vpu_default()

    labels = jnp.argmax(y, axis=1).astype(jnp.int32)                 # one-hot -> label id

    n128 = _round_up(n, 128)
    # Column tile: large, to amortize per-grid-step overhead and cut the number
    # of column-stream passes.  Row tile: keep >= 2 row blocks when possible so
    # the "parallel" row axis spans both v7x TensorCores.
    tn = min(tile_n, n128)
    tm = min(tile_m, n128)
    if tm > 128 and _round_up(n, tm) // tm < 2:
        tm = 128 * max(1, (n128 // 2) // 128)

    n_pad_r = _round_up(n, tm)
    n_pad_c = _round_up(n, tn)
    gi, gj = n_pad_r // tm, n_pad_c // tn

    # Rows and columns padded independently (rectangular tiles).
    u_f32 = u.astype(jnp.float32)
    u_row_p = jnp.pad(u_f32, ((0, n_pad_r - n), (0, 0)))
    u_col_p = jnp.pad(u_f32, ((0, n_pad_c - n), (0, 0)))
    lab_row = jnp.pad(labels, (0, n_pad_r - n), constant_values=-1).reshape(n_pad_r, 1)
    lab_col = jnp.pad(labels, (0, n_pad_c - n), constant_values=-1).reshape(1, n_pad_c)

    kernel = functools.partial(
        _dbdh_kernel, n_valid=n, n_pad_cols=n_pad_c, tn=tn,
        pow_=int(pow_), mxu_bf16=bool(mxu_bf16), elem_bf16=bool(elem_bf16))

    # VMEM budget: f32 MXU result + ~8 elementwise temps of the (tm, tn) tile,
    # plus double-buffered row/col operand tiles.  Capped under v7x's 64 MiB.
    elem_bytes = 2 if elem_bf16 else 4
    temp_bytes = tm * tn * (4 + 8 * elem_bytes)
    io_bytes = 2 * 2 * (tm + tn) * nbit * 4
    vmem_limit = min(64 * 1024 * 1024,
                     max(32 * 1024 * 1024, int(2 * (temp_bytes + io_bytes))))

    cost = pl.CostEstimate(
        flops=2 * n_pad_r * n_pad_c * (nbit + 1),
        transcendentals=2 * n_pad_r * n_pad_c,
        bytes_accessed=(gj * n_pad_r + gi * n_pad_c) * nbit * 4 + 8 * n_pad_r,
    )

    lik_rows, quant_rows = pl.pallas_call(
        kernel,
        grid=(gi, gj),
        in_specs=[
            pl.BlockSpec((tm, nbit), lambda i, j: (i, 0)),   # u row tile
            pl.BlockSpec((tn, nbit), lambda i, j: (j, 0)),   # u col tile
            pl.BlockSpec((tm, 1),    lambda i, j: (i, 0)),   # labels (rows)
            pl.BlockSpec((1, tn),    lambda i, j: (0, j)),   # labels (cols)
        ],
        out_specs=(
            pl.BlockSpec((tm, 1), lambda i, j: (i, 0)),      # per-row likelihood partial
            pl.BlockSpec((tm, 1), lambda i, j: (i, 0)),      # per-row quantization term
        ),
        out_shape=(
            jax.ShapeDtypeStruct((n_pad_r, 1), jnp.float32),
            jax.ShapeDtypeStruct((n_pad_r, 1), jnp.float32),
        ),
        compiler_params=pltpu.CompilerParams(
            dimension_semantics=("parallel", "arbitrary"),
            vmem_limit_bytes=vmem_limit),
        cost_estimate=cost,
    )(u_row_p, u_col_p, lab_row, lab_col)

    # Final (tiny) reductions in plain JAX; divide by true counts once.
    likelihood = jnp.sum(lik_rows[:n, 0]) / (n * n)
    quantization = jnp.sum(quant_rows[:n, 0]) / n
    loss = likelihood + alpha * quantization
    # losses dict equivalent: {'likelihood': likelihood, 'quantization': quantization}
    return loss, likelihood, quantization


def dbdh_loss_ref(u, y, *, alpha=1.0, pow_=2):
    """Pure-JAX reference mirroring the PyTorch module (f32 throughout)."""
    y = y.astype(jnp.float32)
    u = jnp.clip(u.astype(jnp.float32), -1.0, 1.0)
    hp = jax.lax.Precision.HIGHEST
    sim = (jnp.matmul(y, y.T, precision=hp) > 0).astype(jnp.float32)
    dot = jnp.matmul(u, u.T, precision=hp) * 0.5
    log_trick = jnp.log1p(jnp.exp(-jnp.abs(dot))) + jnp.maximum(dot, 0.0)
    likelihood = jnp.mean(log_trick - sim * dot)
    um = jnp.mean(u, axis=1)
    quant = jnp.mean(jnp.abs(um)) if pow_ == 1 else jnp.mean(um ** 2)
    return likelihood + alpha * quant, likelihood, quant


if __name__ == "__main__":
    # Small shapes consistent with the module: N samples, nbit hash bits,
    # nclass one-hot classes.  N=200 exercises padded rows/cols; the explicit
    # 128-tile run exercises multi-block grid + cross-column accumulation.
    key = jax.random.PRNGKey(0)
    ku, ky = jax.random.split(key)
    N, NBIT, NCLASS = 200, 32, 10

    u = jax.random.normal(ku, (N, NBIT), dtype=jnp.float32) * 2.0   # exercises the clamp
    labels = jax.random.randint(ky, (N,), 0, NCLASS)
    y = jax.nn.one_hot(labels, NCLASS, dtype=jnp.float32)

    ref_loss, ref_lik, ref_quant = dbdh_loss_ref(u, y, alpha=1.0, pow_=2)

    # 1) Exact f32 path with small tiles: multi-block rows AND columns,
    #    cross-column accumulation, masked padded columns.  Tight check.
    l32, lik32, q32 = dbdh_loss(u, y, alpha=1.0, pow_=2,
                                tile_m=128, tile_n=128,
                                mxu_bf16=False, elem_bf16=False)
    jax.block_until_ready(l32)
    assert jnp.allclose(l32, ref_loss, rtol=1e-4, atol=1e-4), (l32, ref_loss)
    assert jnp.allclose(lik32, ref_lik, rtol=1e-4, atol=1e-4), (lik32, ref_lik)
    assert jnp.allclose(q32, ref_quant, rtol=1e-4, atol=1e-4), (q32, ref_quant)

    # 2) Default performance configuration (rectangular tiles, auto bf16
    #    elementwise chain on v6e/v7x).  Relaxed check (bf16 rounding).
    ld, likd, qd = dbdh_loss(u, y, alpha=1.0, pow_=2)
    jax.block_until_ready(ld)
    assert jnp.allclose(ld, ref_loss, rtol=3e-2, atol=3e-2), (ld, ref_loss)

    # 3) pow = 1 quantization variant, exact path, default tiles.
    ref1_loss, _, _ = dbdh_loss_ref(u, y, alpha=0.5, pow_=1)
    l1, _, _ = dbdh_loss(u, y, alpha=0.5, pow_=1, mxu_bf16=False, elem_bf16=False)
    jax.block_until_ready(l1)
    assert jnp.allclose(l1, ref1_loss, rtol=1e-4, atol=1e-4), (l1, ref1_loss)

    print("KERNEL_OK")
</pallas_src>

<mosaic_0001>
module attributes {stable_mosaic.version = 11 : i64} {
  func.func @_dbdh_kernel(%arg0: i32, %arg1: i32, %arg2: memref<128x32xf32, #tpu.memory_space<vmem>>, %arg3: memref<128x32xf32, #tpu.memory_space<vmem>>, %arg4: memref<128x1xi32, #tpu.memory_space<vmem>>, %arg5: memref<1x128xi32, #tpu.memory_space<vmem>>, %arg6: memref<128x1xf32, #tpu.memory_space<vmem>>, %arg7: memref<128x1xf32, #tpu.memory_space<vmem>>) attributes {dimension_semantics = [#tpu.dimension_semantics<parallel>, #tpu.dimension_semantics<arbitrary>], iteration_bounds = array<i64: 2, 2>, scalar_prefetch = 0 : i64, scratch_operands = 0 : i64, tpu.core_type = #tpu.core_type<tc>, window_params = [{transform_indices = @transform_0, window_bounds = array<i64: 128, 32>}, {transform_indices = @transform_1, window_bounds = array<i64: 128, 32>}, {transform_indices = @transform_2, window_bounds = array<i64: 128, 1>}, {transform_indices = @transform_3, window_bounds = array<i64: 1, 128>}, {transform_indices = @transform_4, window_bounds = array<i64: 128, 1>}, {transform_indices = @transform_5, window_bounds = array<i64: 128, 1>}]} {
    %c0 = arith.constant 0 : index
    %c0_0 = arith.constant 0 : index
    %0 = vector.load %arg2[%c0, %c0_0] : memref<128x32xf32, #tpu.memory_space<vmem>>, vector<128x32xf32>
    %cst = arith.constant -1.000000e+00 : f32
    %cst_1 = arith.constant 1.000000e+00 : f32
    %1 = vector.broadcast %cst : f32 to vector<128x32xf32>
    %2 = arith.maximumf %1, %0 : vector<128x32xf32>
    %3 = vector.broadcast %cst_1 : f32 to vector<128x32xf32>
    %4 = arith.minimumf %3, %2 : vector<128x32xf32>
    %c0_2 = arith.constant 0 : index
    %c0_3 = arith.constant 0 : index
    %5 = vector.load %arg3[%c0_2, %c0_3] : memref<128x32xf32, #tpu.memory_space<vmem>>, vector<128x32xf32>
    %cst_4 = arith.constant -1.000000e+00 : f32
    %cst_5 = arith.constant 1.000000e+00 : f32
    %6 = vector.broadcast %cst_4 : f32 to vector<128x32xf32>
    %7 = arith.maximumf %6, %5 : vector<128x32xf32>
    %8 = vector.broadcast %cst_5 : f32 to vector<128x32xf32>
    %9 = arith.minimumf %8, %7 : vector<128x32xf32>
    %cst_6 = arith.constant 5.000000e-01 : f32
    %10 = vector.broadcast %cst_6 : f32 to vector<128x32xf32>
    %11 = arith.mulf %10, %4 : vector<128x32xf32>
    %cst_7 = arith.constant dense<0.000000e+00> : vector<128x128xf32>
    %12 = tpu.matmul %11, %9, %cst_7 {dimension_numbers = #tpu.dot_dimension_numbers<[1], [1], [0], [0], [0, 0, 1, 0], [], []>} : vector<128x32xf32>, vector<128x32xf32>, vector<128x128xf32> -> vector<128x128xf32>
    %c0_8 = arith.constant 0 : index
    %c0_9 = arith.constant 0 : index
    %13 = vector.load %arg4[%c0_8, %c0_9] : memref<128x1xi32, #tpu.memory_space<vmem>>, vector<128x1xi32>
    %c0_10 = arith.constant 0 : index
    %c0_11 = arith.constant 0 : index
    %14 = vector.load %arg5[%c0_10, %c0_11] : memref<1x128xi32, #tpu.memory_space<vmem>>, vector<1x128xi32>
    %15 = vector.broadcast %13 : vector<128x1xi32> to vector<128x128xi32>
    %16 = vector.broadcast %14 : vector<1x128xi32> to vector<128x128xi32>
    %17 = arith.cmpi eq, %15, %16 : vector<128x128xi32>
    %cst_12 = arith.constant 0.000000e+00 : f32
    %18 = vector.broadcast %cst_12 : f32 to vector<128x128xf32>
    %19 = arith.subf %18, %12 : vector<128x128xf32>
    %20 = arith.select %17, %19, %12 : vector<128x128xi1>, vector<128x128xf32>
    %21 = math.absf %20 : vector<128x128xf32>
    %cst_13 = arith.constant 0.000000e+00 : f32
    %22 = vector.broadcast %cst_13 : f32 to vector<128x128xf32>
    %23 = arith.subf %22, %21 : vector<128x128xf32>
    %24 = math.exp %23 : vector<128x128xf32>
    %25 = math.log1p %24 : vector<128x128xf32>
    %cst_14 = arith.constant 0.000000e+00 : f32
    %26 = vector.broadcast %cst_14 : f32 to vector<128x128xf32>
    %27 = arith.maximumf %20, %26 : vector<128x128xf32>
    %28 = arith.addf %25, %27 : vector<128x128xf32>
    %c128_i32 = arith.constant 128 : i32
    %29 = arith.muli %arg1, %c128_i32 : i32
    %30 = tpu.iota {dimensions = array<i32: 0>} : vector<128x1xi32>
    %31 = vector.broadcast %29 : i32 to vector<128x1xi32>
    %32 = arith.addi %31, %30 : vector<128x1xi32>
    %c200_i32 = arith.constant 200 : i32
    %33 = vector.broadcast %c200_i32 : i32 to vector<128x1xi32>
    %34 = arith.cmpi slt, %32, %33 : vector<128x1xi32>
    %35 = arith.extui %34 : vector<128x1xi1> to vector<128x1xi32>
    %36 = arith.sitofp %35 : vector<128x1xi32> to vector<128x1xf32>
    %cst_15 = arith.constant dense<0.000000e+00> : vector<128x1xf32>
    %37 = tpu.matmul %28, %36, %cst_15 {dimension_numbers = #tpu.dot_dimension_numbers<[1], [0], [0], [1], [0, 0, 1, 1], [], []>} : vector<128x128xf32>, vector<128x1xf32>, vector<128x1xf32> -> vector<128x1xf32>
    %c0_i32 = arith.constant 0 : i32
    %38 = arith.cmpi eq, %arg1, %c0_i32 : i32
    %39 = arith.extui %38 : i1 to i32
    %c0_i32_16 = arith.constant 0 : i32
    %40 = arith.cmpi ne, %39, %c0_i32_16 : i32
    scf.if %40 {
      %c0_19 = arith.constant 0 : index
      %c0_20 = arith.constant 0 : index
      %44 = vector.load %arg6[%c0_19, %c0_20] : memref<128x1xf32, #tpu.memory_space<vmem>>, vector<128x1xf32>
      tpu.vector_store %arg6[%c0_19, %c0_20], %37 {strides = array<i32>} : memref<128x1xf32, #tpu.memory_space<vmem>>, vector<128x1xf32>,
      %cst_21 = arith.constant dense<0.000000e+00> : vector<128xf32>
      %45 = vector.multi_reduction <add>, %4, %cst_21 [1] : vector<128x32xf32> to vector<128xf32>
      %46 = vector.shape_cast %45 : vector<128xf32> to vector<128x1xf32>
      %cst_22 = arith.constant 3.200000e+01 : f32
      %47 = vector.broadcast %cst_22 : f32 to vector<128x1xf32>
      %48 = arith.divf %46, %47 : vector<128x1xf32>
      %49 = arith.mulf %48, %48 : vector<128x1xf32>
      %c0_23 = arith.constant 0 : index
      %c0_24 = arith.constant 0 : index
      %50 = vector.load %arg7[%c0_23, %c0_24] : memref<128x1xf32, #tpu.memory_space<vmem>>, vector<128x1xf32>
      tpu.vector_store %arg7[%c0_23, %c0_24], %49 {strides = array<i32>} : memref<128x1xf32, #tpu.memory_space<vmem>>, vector<128x1xf32>,
    } else {
    }
    %c0_i32_17 = arith.constant 0 : i32
    %41 = arith.cmpi sgt, %arg1, %c0_i32_17 : i32
    %42 = arith.extui %41 : i1 to i32
    %c0_i32_18 = arith.constant 0 : i32
    %43 = arith.cmpi ne, %42, %c0_i32_18 : i32
    scf.if %43 {
      %c0_19 = arith.constant 0 : index
      %c0_20 = arith.constant 0 : index
      %44 = vector.load %arg6[%c0_19, %c0_20] : memref<128x1xf32, #tpu.memory_space<vmem>>, vector<128x1xf32>
      %45 = arith.addf %44, %37 : vector<128x1xf32>
      %c0_21 = arith.constant 0 : index
      %c0_22 = arith.constant 0 : index
      %46 = vector.load %arg6[%c0_21, %c0_22] : memref<128x1xf32, #tpu.memory_space<vmem>>, vector<128x1xf32>
      tpu.vector_store %arg6[%c0_21, %c0_22], %45 {strides = array<i32>} : memref<128x1xf32, #tpu.memory_space<vmem>>, vector<128x1xf32>,
    } else {
    }
    return
  }
  func.func @transform_0(%arg0: i32, %arg1: i32) -> (i32, i32) {
    %c0_i32 = arith.constant 0 : i32
    %c0_i32_0 = arith.constant 0 : i32
    return %arg0, %c0_i32 : i32, i32
  }
  func.func @transform_1(%arg0: i32, %arg1: i32) -> (i32, i32) {
    %c0_i32 = arith.constant 0 : i32
    %c0_i32_0 = arith.constant 0 : i32
    return %arg1, %c0_i32 : i32, i32
  }
  func.func @transform_2(%arg0: i32, %arg1: i32) -> (i32, i32) {
    %c0_i32 = arith.constant 0 : i32
    %c0_i32_0 = arith.constant 0 : i32
    return %arg0, %c0_i32 : i32, i32
  }
  func.func @transform_3(%arg0: i32, %arg1: i32) -> (i32, i32) {
    %c0_i32 = arith.constant 0 : i32
    %c0_i32_0 = arith.constant 0 : i32
    return %c0_i32, %arg1 : i32, i32
  }
  func.func @transform_4(%arg0: i32, %arg1: i32) -> (i32, i32) {
    %c0_i32 = arith.constant 0 : i32
    %c0_i32_0 = arith.constant 0 : i32
    return %arg0, %c0_i32 : i32, i32
  }
  func.func @transform_5(%arg0: i32, %arg1: i32) -> (i32, i32) {
    %c0_i32 = arith.constant 0 : i32
    %c0_i32_0 = arith.constant 0 : i32
    return %arg0, %c0_i32 : i32, i32
  }
}

</mosaic_0001>

<bundles_post_ra>
// kernel: tpu_custom_call.1
= control target key start
LH: loop header
LB: loop body
LE: loop exit
PB: predicated region body
PF: predicated region fallthrough
CT: control target
= control target key end

     0   :  { %s1766_s18 = smov 0   ;;  %s1768_s19 = smov 0   ;;  %s2504_s0 = inlined_call_operand.vmem [shape: f32[256,32], index: 0, kind: input, shape index: {}]   ;;  %s2505_s1 = inlined_call_operand.vmem [shape: f32[256,32], index: 1, kind: input, shape index: {}]   ;;  %s2506_s2 = inlined_call_operand.vmem [shape: s32[256,1], index: 2, kind: input, shape index: {}]   ;;  %s2507_s3 = inlined_call_operand.vmem [shape: s32[1,256], index: 3, kind: input, shape index: {}]   ;;  %s2508_s4 = inlined_call_operand.vmem [shape: f32[256,1], index: 4, kind: output, shape index: {0}]   ;;  %s2509_s5 = inlined_call_operand.vmem [shape: f32[256,1], index: 5, kind: output, shape index: {1}]  }
   0x1   :  { %s1770_s20 = smov 0   ;;  %s1772_s21 = smov 0  }
   0x2   :  { %s1774_s22 = smov 0  }
   0x3 LB: > { %s25_s23 = sadd.s32 1, %s1723_s20  ;;  %s28_s24 = sadd.s32 1, %s1727_s21  ;;  %s1731_s22 = sphi %s1774_s22, %s16_s22   ;;  %s1727_s21 = sphi %s1772_s21, %s2535_s21   ;;  %s1723_s20 = sphi %s1770_s20, %s2534_s20   ;;  %s1719_s19 = sphi %s1768_s19, %s2533_s19   ;;  %s1715_s18 = sphi %s1766_s18, %s2532_s18  }
   0x4   : > { %p26_p0 = scmp.ge.s32.totalorder %s25_s23, 2  ;;  %p1404_p1 = scmp.ge.s32.totalorder %s1731_s22, 1 }
   0x5   : > { %p233_p2 = scmp.lt.s32.totalorder %s1731_s22, 5 }
   0x6   : > { %s2537_s23 = smov (%p26_p0, %s25_s23), 0  ;;  %s2539_s24 = smov (!%p26_p0, %s28_s24), %s1727_s21 }
   0x7   : > { %p234_p3 = pnand %p1404_p1, %p233_p2  ;;  %p30_p4 = scmp.ge.s32.totalorder %s2539_s24, 2 }
   0x8   : > { %s1407_s25 = sshll.u32 (!%p234_p3), %s1715_s18, 4  ;;  %s1405_s26 = sshll.u32 (!%p234_p3), %s1719_s19, 4 }
   0x9   : > { %s2541_s24 = smov (%p30_p4, %s2539_s24), 0  ;;  %237 = sbr.rel (%p234_p3) target bundleno = 651 (0x28b), region = 36 }
   0xa   : > { %p286_p5 = scmp.lt.s32.totalorder (!%p234_p3), %s1407_s25, 31  ;;  %p280_p6 = scmp.lt.s32.totalorder (!%p234_p3), %s1405_s26, 31 }
   0xb   : > { %p297_p7 = scmp.lt.s32.totalorder (!%p234_p3), %s1715_s18, 1  ;;  %s1479_s29 = sshll.u32 (!%p234_p3), %s1715_s18, 7 }
   0xc   : > { %p1512_p8 = scmp.ne.s32.totalorder (!%p234_p3), %s1715_s18, 0 }
   0xe   : > { %s2543_s25 = smov (!%p286_p5, %s1407_s25), 31  ;;  %s2545_s26 = smov (!%p280_p6, %s1405_s26), 31  ;;  %vm424_vm0 = vcmask 261120   ;;  %v1733_v7 = vmov 0  }
   0xf   : > { %s1408_s27 = sshll.u32 %s2543_s25, 3  ;;  %s1805_s6 = sshll.u32 %s2545_s26, 3  ;;  %1623 = vset.pattern.permute.xlu0 %v1733_v7  ;;  %1624 = vset.pattern.permute.xlu1 %v1733_v7 }
  0x10   : > { %s1803_s30 = scalar_lea.vmem %s2505_s1, %s1408_s27  ;;  %s1813_s9 = scalar_lea.vmem %s2508_s4, %s1805_s6  ;;  %1625 = vset.pattern.permute.xlu2 %v1733_v7 }
  0x11   : > { %v375_v0 = vld [vmem:[%s1803_s30 + $0x78] sm:$0xff]  ;;  %v374_v1 = vld [vmem:[%s1803_s30 + $0x70] sm:$0xff]  ;;  %s1819_s12 = scalar_lea.vmem %s2509_s5, %s1805_s6  ;;  %v373_v4 = vld [vmem:[%s1803_s30 + $0x68] sm:$0xff]  ;;  %s1840_s25 = scalar_lea.vmem %s2506_s2, %s1805_s6 }
  0x12   : > { %v1446_v2 = vclamps-f32 %v375_v0, 1.0  ;;  %v1445_v3 = vclamps-f32 %v374_v1, 1.0  ;;  %s1824_s13 = scalar_select %p297_p7, %s1715_s18, 1  ;;  %v1444_v5 = vclamps-f32 %v373_v4, 1.0  ;;  %v372_v6 = vld [vmem:[%s1803_s30 + $0x60] sm:$0xff]  ;;  %v371_v9 = vld [vmem:[%s1803_s30 + $0x58] sm:$0xff] }
  0x13   : > { %v1443_v8 = vclamps-f32 %v372_v6, 1.0  ;;  %v588_v10 = vld [vmem:[%s1840_s25 + $0x10] sm:$0xff]  ;;  %v1442_v11 = vclamps-f32 %v371_v9, 1.0  ;;  %v369_v14 = vld [vmem:[%s1803_s30 + $0x48] sm:$0xff]  ;;  %v589_v15 = vld [vmem:[%s1840_s25 + $0x18] sm:$0xff]  ;;  %s1900_s28 = scalar_lea.vmem %s2504_s0, %s1805_s6 }
  0x14   : > { %1447 = vmatpush.xpose.msk.msra.mxu0 %vm424_vm0, %v1446_v2  ;;  %1516 = vmatpush.xpose.msk.msra.mxu2 %vm424_vm0, %v1446_v2  ;;  %s299_s16 = scalar_lea.vmem %s2507_s3, %s1824_s13  ;;  %v370_v12 = vld [vmem:[%s1803_s30 + $0x50] sm:$0xff]  ;;  %v1440_v16 = vclamps-f32 %v369_v14, 1.0  ;;  %v368_v17 = vld [vmem:[%s1803_s30 + $0x40] sm:$0xff]  ;;  %v367_v19 = vld [vmem:[%s1803_s30 + $0x38] sm:$0xff] }
  0x15   : > { %1517 = vmatpush.xpose.msk.msra.mxu3 %vm424_vm0, %v1446_v2  ;;  %610 = vperm.xlu0 %1623, %v588_v10   ;;  %v1441_v13 = vclamps-f32 %v370_v12, 1.0  ;;  %v1439_v18 = vclamps-f32 %v368_v17, 1.0  ;;  %v594_v20 = vld [vmem:[%s1840_s25 + $0x40] sm:$0xff]  ;;  %v1438_v21 = vclamps-f32 %v367_v19, 1.0  ;;  %v366_v22 = vld [vmem:[%s1803_s30 + $0x30] sm:$0xff]  ;;  %v365_v25 = vld [vmem:[%s1803_s30 + $0x28] sm:$0xff] }
  0x16   : > { %v1437_v23 = vclamps-f32 %v366_v22, 1.0  ;;  %v596_v24 = vld [vmem:[%s1840_s25 + $0x50] sm:$0xff]  ;;  %v1436_v26 = vclamps-f32 %v365_v25, 1.0  ;;  %v364_v27 = vld [vmem:[%s1803_s30 + $0x20] sm:$0xff]  ;;  %v597_v30 = vld [vmem:[%s1840_s25 + $0x58] sm:$0xff] }
  0x17   : > { %v1435_v28 = vclamps-f32 %v364_v27, 1.0  ;;  %v590_v29 = vld [vmem:[%s1840_s25 + $0x20] sm:$0xff]  ;;  %v592_v31 = vld [vmem:[%s1840_s25 + $0x30] sm:$0xff]  ;;  %v363_v32 = vld [vmem:[%s1803_s30 + $0x18] sm:$0xff] }
  0x18   : > { %1448 = vmatpush.xpose.msk.msra.mxu0 %vm424_vm0, %v1445_v3  ;;  %1518 = vmatpush.xpose.msk.msra.mxu2 %vm424_vm0, %v1445_v3  ;;  %v1434_v33 = vclamps-f32 %v363_v32, 1.0  ;;  %v362_v34 = vld [vmem:[%s1803_s30 + $0x10] sm:$0xff]  ;;  %v591_v36 = vld [vmem:[%s1840_s25 + $0x28] sm:$0xff]  ;;  %v598_v37 = vld [vmem:[%s1840_s25 + $0x60] sm:$0xff] }
  0x19   : > { %1519 = vmatpush.xpose.msk.msra.mxu3 %vm424_vm0, %v1445_v3  ;;  %616 = vperm.xlu1 %1624, %v590_v29   ;;  %v1433_v35 = vclamps-f32 %v362_v34, 1.0  ;;  %v593_v38 = vld [vmem:[%s1840_s25 + $0x38] sm:$0xff]  ;;  %v361_v39 = vld [vmem:[%s1803_s30 + $0x8] sm:$0xff]  ;;  %v1905_v41 = vld [vmem:[%s1900_s28] sm:$0xff]  ;;  %v941_v34 = vlaneseq }
  0x1a   : > { %622 = vperm.xlu2 %1625, %v592_v31   ;;  %v1432_v40 = vclamps-f32 %v361_v39, 1.0  ;;  %v1908_v42 = vld [vmem:[%s1900_s28 + $0x28] sm:$0xff]  ;;  %v360_v43 = vld [vmem:[%s1803_s30] sm:$0xff]  ;;  %v1415_v45 = vclamps-f32 %v1905_v41, 1.0  ;;  %v1935_v55 = vld [vmem:[%s1900_s28 + $0x30] sm:$0xff]  ;;  %v2040_v39 = vstv %s1479_s29 }
  0x1b   : > { %v1913_v44 = vld [vmem:[%s1900_s28 + $0x60] sm:$0xff]  ;;  %v1420_v46 = vclamps-f32 %v1908_v42, 1.0  ;;  %v1431_v47 = vclamps-f32 %v360_v43, 1.0  ;;  %v595_v49 = vld [vmem:[%s1840_s25 + $0x48] sm:$0xff]  ;;  %v2519_v58 = vclamps-f32 %v1935_v55, 1.0  ;;  %v600_v59 = vld [vmem:[%s1840_s25 + $0x70] sm:$0xff] }
  0x1c   : > { %1449 = vmatpush.xpose.msk.msra.mxu0 %vm424_vm0, %v1444_v5  ;;  %1520 = vmatpush.xpose.msk.msra.mxu2 %vm424_vm0, %v1444_v5  ;;  %v2513_v48 = vclamps-f32 %v1913_v44, 1.0  ;;  %v599_v50 = vld [vmem:[%s1840_s25 + $0x68] sm:$0xff]  ;;  %v408_v51 = vmul.f32 0.5, %v1415_v45  ;;  %v586_v60 = vld [vmem:[%s1840_s25] sm:$0xff]  ;;  %v1956_v1 = vld [vmem:[%s1900_s28 + $0x10] sm:$0xff] }
  0x1d   : > { %1521 = vmatpush.xpose.msk.msra.mxu3 %vm424_vm0, %v1444_v5  ;;  %613 = vperm.xlu0 %1623, %v589_v15   ;;  %v413_v52 = vmul.f32 0.5, %v1420_v46  ;;  %v1932_v54 = vld [vmem:[%s1900_s28 + $0x8] sm:$0xff]  ;;  %v414_v63 = vmul.f32 0.5, %v2519_v58  ;;  %v1959_v2 = vld [vmem:[%s1900_s28 + $0x38] sm:$0xff]  ;;  %v1962_v3 = vld [vmem:[%s1900_s28 + $0x70] sm:$0xff]  ;;  %v1417_v4 = vclamps-f32 %v1956_v1, 1.0 }
  0x1e   : > { %v420_v53 = vmul.f32 0.5, %v2513_v48  ;;  %v1939_v56 = vld [vmem:[%s1900_s28 + $0x68] sm:$0xff]  ;;  %v1416_v57 = vclamps-f32 %v1932_v54, 1.0  ;;  %v2517_v5 = vclamps-f32 %v1959_v2, 1.0  ;;  %v601_v6 = vld [vmem:[%s1840_s25 + $0x78] sm:$0xff]  ;;  %v2015_v27 = vld [vmem:[%s1900_s28 + $0x50] sm:$0xff] }
  0x1f   : > { %v2511_v61 = vclamps-f32 %v1939_v56, 1.0  ;;  %v587_v7 = vld [vmem:[%s1840_s25 + $0x8] sm:$0xff]  ;;  %v410_v9 = vmul.f32 0.5, %v1417_v4  ;;  %v1979_v12 = vld [vmem:[%s1900_s28 + $0x18] sm:$0xff] }
  0x20   : > { %1450 = vmatpush.xpose.msk.msra.mxu0 %vm424_vm0, %v1443_v8  ;;  %1522 = vmatpush.xpose.msk.msra.mxu2 %vm424_vm0, %v1443_v8  ;;  %v409_v62 = vmul.f32 0.5, %v1416_v57  ;;  %v415_v10 = vmul.f32 0.5, %v2517_v5  ;;  %v1985_v14 = vld [vmem:[%s1900_s28 + $0x78] sm:$0xff]  ;;  %v1418_v15 = vclamps-f32 %v1979_v12, 1.0  ;;  %v2003_v22 = vld [vmem:[%s1900_s28 + $0x48] sm:$0xff] }
  0x21   : > { %1523 = vmatpush.xpose.msk.msra.mxu3 %vm424_vm0, %v1443_v8  ;;  %619 = vperm.xlu1 %1624, %v591_v36   ;;  %v421_v0 = vmul.f32 0.5, %v2511_v61  ;;  %v2512_v8 = vclamps-f32 %v1962_v3, 1.0  ;;  %v2510_v17 = vclamps-f32 %v1985_v14, 1.0 }
  0x22   : > { %625 = vperm.xlu2 %1625, %v593_v38  }
  0x24   : > { %1451 = vmatpush.xpose.msk.msra.mxu0 %vm424_vm0, %v1442_v11  ;;  %1524 = vmatpush.xpose.msk.msra.mxu2 %vm424_vm0, %v1442_v11 }
  0x25   : > { %1525 = vmatpush.xpose.msk.msra.mxu3 %vm424_vm0, %v1442_v11  ;;  %628 = vperm.xlu0 %1623, %v594_v20   ;;  %v422_v11 = vmul.f32 0.5, %v2512_v8  ;;  %v423_v20 = vmul.f32 0.5, %v2510_v17 }
  0x28   : > { %1452 = vmatpush.xpose.msk.msra.mxu0 %vm424_vm0, %v1441_v13  ;;  %1526 = vmatpush.xpose.msk.msra.mxu2 %vm424_vm0, %v1441_v13 }
  0x29   : > { %1527 = vmatpush.xpose.msk.msra.mxu3 %vm424_vm0, %v1441_v13  ;;  %631 = vperm.xlu1 %1624, %v595_v49   ;;  %v1982_v13 = vld [vmem:[%s1900_s28 + $0x40] sm:$0xff]  ;;  %v1734_v49 = vmov 1.0  }
  0x2a   : > { %643 = vperm.xlu2 %1625, %v599_v50  }
  0x2c   : > { %1453 = vmatpush.xpose.msk.msra.mxu0 %vm424_vm0, %v1440_v16  ;;  %1528 = vmatpush.xpose.msk.msra.mxu2 %vm424_vm0, %v1440_v16 }
  0x2d   : > { %1529 = vmatpush.xpose.msk.msra.mxu3 %vm424_vm0, %v1440_v16  ;;  %634 = vperm.xlu0 %1623, %v596_v24   ;;  %v2518_v16 = vclamps-f32 %v1982_v13, 1.0  ;;  %v2516_v24 = vclamps-f32 %v2003_v22, 1.0 }
  0x2f   : > { %v416_v19 = vmul.f32 0.5, %v2518_v16 }
  0x30   : > { %1454 = vmatpush.xpose.msk.msra.mxu0 %vm424_vm0, %v1439_v18  ;;  %1530 = vmatpush.xpose.msk.msra.mxu2 %vm424_vm0, %v1439_v18 }
  0x31   : > { %1531 = vmatpush.xpose.msk.msra.mxu3 %vm424_vm0, %v1439_v18  ;;  %646 = vperm.xlu1 %1624, %v600_v59   ;;  %v411_v18 = vmul.f32 0.5, %v1418_v15 }
  0x32   : > { %604 = vperm.xlu2 %1625, %v586_v60  }
  0x34   : > { %1455 = vmatpush.xpose.msk.msra.mxu0 %vm424_vm0, %v1438_v21  ;;  %1532 = vmatpush.xpose.msk.msra.mxu2 %vm424_vm0, %v1438_v21 }
  0x35   : > { %1533 = vmatpush.xpose.msk.msra.mxu3 %vm424_vm0, %v1438_v21  ;;  %637 = vperm.xlu0 %1623, %v597_v30   ;;  %v2000_v21 = vld [vmem:[%s1900_s28 + $0x20] sm:$0xff]  ;;  %v2023_v30 = vld [vmem:[%s1900_s28 + $0x58] sm:$0xff] }
  0x36   : > { %v2515_v31 = vclamps-f32 %v2023_v30, 1.0 }
  0x38   : > { %1456 = vmatpush.xpose.msk.msra.mxu0 %vm424_vm0, %v1437_v23  ;;  %1534 = vmatpush.xpose.msk.msra.mxu2 %vm424_vm0, %v1437_v23  ;;  %v419_v32 = vmul.f32 0.5, %v2515_v31 }
  0x39   : > { %1535 = vmatpush.xpose.msk.msra.mxu3 %vm424_vm0, %v1437_v23  ;;  %649 = vperm.xlu1 %1624, %v601_v6   ;;  %v1419_v23 = vclamps-f32 %v2000_v21, 1.0 }
  0x3a   : > { %607 = vperm.xlu2 %1625, %v587_v7  }
  0x3b   : > { %v412_v25 = vmul.f32 0.5, %v1419_v23 }
  0x3c   : > { %1457 = vmatpush.xpose.msk.msra.mxu0 %vm424_vm0, %v1436_v26  ;;  %1536 = vmatpush.xpose.msk.msra.mxu2 %vm424_vm0, %v1436_v26 }
  0x3d   : > { %1537 = vmatpush.xpose.msk.msra.mxu3 %vm424_vm0, %v1436_v26  ;;  %640 = vperm.xlu0 %1623, %v598_v37   ;;  %v417_v26 = vmul.f32 0.5, %v2516_v24 }
  0x40   : > { %1458 = vmatpush.xpose.msk.msra.mxu0 %vm424_vm0, %v1435_v28  ;;  %1538 = vmatpush.xpose.msk.msra.mxu2 %vm424_vm0, %v1435_v28 }
  0x41   : > { %1539 = vmatpush.xpose.msk.msra.mxu3 %vm424_vm0, %v1435_v28  ;;  %v2514_v28 = vclamps-f32 %v2015_v27, 1.0 }
  0x43   : > { %v418_v29 = vmul.f32 0.5, %v2514_v28 }
  0x44   : > { %1459 = vmatpush.xpose.msk.msra.mxu0 %vm424_vm0, %v1434_v33  ;;  %1540 = vmatpush.xpose.msk.msra.mxu2 %vm424_vm0, %v1434_v33 }
  0x45   : > { %1541 = vmatpush.xpose.msk.msra.mxu3 %vm424_vm0, %v1434_v33 }
  0x48   : > { %1460 = vmatpush.xpose.msk.msra.mxu0 %vm424_vm0, %v1433_v35  ;;  %1542 = vmatpush.xpose.msk.msra.mxu2 %vm424_vm0, %v1433_v35 }
  0x49   : > { %1543 = vmatpush.xpose.msk.msra.mxu3 %vm424_vm0, %v1433_v35  ;;  %v2033_v35 = vshrl.u32 %v941_v34, 7 }
  0x4b   : > { %v957_v37 = vadd.s32 120, %v2033_v35  ;;  %v956_v43 = vadd.s32 112, %v2033_v35  ;;  %v955_v50 = vadd.s32 104, %v2033_v35  ;;  %v953_v59 = vadd.s32 88, %v2033_v35 }
  0x4c   : > { %1461 = vmatpush.xpose.msk.msra.mxu0 %vm424_vm0, %v1432_v40  ;;  %1544 = vmatpush.xpose.msk.msra.mxu2 %vm424_vm0, %v1432_v40  ;;  %v951_v7 = vadd.s32 72, %v2033_v35 }
  0x4d   : > { %1545 = vmatpush.xpose.msk.msra.mxu3 %vm424_vm0, %v1432_v40  ;;  %v974_v40 = vadd.s32 %v2040_v39, %v957_v37  ;;  %v946_v37 = vadd.s32 32, %v2033_v35 }
  0x4f   : > { %vm990_vm1 = vcmp.lt.s32.totalorder %v974_v40, 200 }
  0x50   : > { %1462 = vmatpush.xpose.msk.msra.mxu0 %vm424_vm0, %v1431_v47  ;;  %1546 = vmatpush.xpose.msk.msra.mxu2 %vm424_vm0, %v1431_v47 }
  0x51   : > { %1547 = vmatpush.xpose.msk.msra.mxu3 %vm424_vm0, %v1431_v47  ;;  %v973_v47 = vadd.s32 %v2040_v39, %v956_v43  ;;  %1548 = vmatpush.msk.msra.mxu1 %vm990_vm1, %v1734_v49  ;;  %v963_v43 = vadd.s32 %v2040_v39, %v946_v37 }
  0x53   : > { %1463 = vmatmul.msk.f32.vlgmr.msra.gmra.mxu0 %vm424_vm0, %v408_v51  ;;  %1468 = vmatmul.msk.f32.vlgmr.msra.gmra.mxu2 %vm424_vm0, %v413_v52  ;;  %vm989_vm2 = vcmp.lt.s32.totalorder %v973_v47, 200  ;;  %v954_v51 = vadd.s32 96, %v2033_v35  ;;  %v972_v52 = vadd.s32 %v2040_v39, %v955_v50  ;;  %v945_v47 = vadd.s32 24, %v2033_v35 }
  0x54   : > { %1475 = vmatmul.msk.f32.vlgmr.msra.gmra.mxu3 %vm424_vm0, %v420_v53  ;;  %1496 = vmatpush.msk.msrb.mxu0 %vm990_vm1, %v1734_v49  ;;  %vm979_vm12 = vcmp.lt.s32.totalorder %v963_v43, 200 }
  0x55   : > { %1549 = vmatpush.msk.msrb.mxu3 %vm990_vm1, %v1734_v49  ;;  %v971_v53 = vadd.s32 %v2040_v39, %v954_v51  ;;  %1550 = vmatpush.msk.msra.mxu1 %vm989_vm2, %v1734_v49  ;;  %vm988_vm3 = vcmp.lt.s32.totalorder %v972_v52, 200  ;;  %v962_v50 = vadd.s32 %v2040_v39, %v945_v47  ;;  %v944_v51 = vadd.s32 16, %v2033_v35 }
  0x56   : > { %1497 = vmatpush.msk.msrb.mxu0 %vm989_vm2, %v1734_v49 }
  0x57   : > { %1551 = vmatpush.msk.msrb.mxu3 %vm989_vm2, %v1734_v49  ;;  %vm987_vm4 = vcmp.lt.s32.totalorder %v971_v53, 200  ;;  %1552 = vmatpush.msk.msra.mxu1 %vm988_vm3, %v1734_v49  ;;  %vm978_vm13 = vcmp.lt.s32.totalorder %v962_v50, 200  ;;  %v961_v52 = vadd.s32 %v2040_v39, %v944_v51  ;;  %v943_v53 = vadd.s32 8, %v2033_v35 }
  0x58   : > { %1498 = vmatpush.msk.msrb.mxu0 %vm988_vm3, %v1734_v49 }
  0x59   : > { %1553 = vmatpush.msk.msrb.mxu3 %vm988_vm3, %v1734_v49  ;;  %1554 = vmatpush.msk.msra.mxu1 %vm987_vm4, %v1734_v49  ;;  %vm977_vm14 = vcmp.lt.s32.totalorder %v961_v52, 200 }
  0x5a   : > { %1499 = vmatpush.msk.msrb.mxu0 %vm987_vm4, %v1734_v49 }
  0x5b   : > { %1464 = vmatmul.msk.f32.gmra.mxu0 %vm424_vm0, %v409_v62  ;;  %1469 = vmatmul.msk.f32.gmra.mxu2 %vm424_vm0, %v414_v63  ;;  %v970_v62 = vadd.s32 %v2040_v39, %v953_v59  ;;  %v952_v63 = vadd.s32 80, %v2033_v35 }
  0x5c   : > { %1476 = vmatmul.msk.f32.gmra.mxu3 %vm424_vm0, %v421_v0 }
  0x5d   : > { %vm986_vm5 = vcmp.lt.s32.totalorder %v970_v62, 200  ;;  %v969_v6 = vadd.s32 %v2040_v39, %v952_v63  ;;  %1555 = vmatpush.msk.msrb.mxu3 %vm987_vm4, %v1734_v49  ;;  %v960_v62 = vadd.s32 %v2040_v39, %v943_v53 }
  0x5e   : > { %1500 = vmatpush.msk.msrb.mxu0 %vm986_vm5, %v1734_v49  ;;  %1556 = vmatpush.msk.msra.mxu1 %vm986_vm5, %v1734_v49 }
  0x5f   : > { %vm985_vm6 = vcmp.lt.s32.totalorder %v969_v6, 200  ;;  %1557 = vmatpush.msk.msrb.mxu3 %vm986_vm5, %v1734_v49  ;;  %v2127_v6 = vld [vmem:[%s299_s16] ss:$0 sm:$0xff]  ;;  %vm976_vm15 = vcmp.lt.s32.totalorder %v960_v62, 200 }
  0x60   : > { %1501 = vmatpush.msk.msrb.mxu0 %vm985_vm6, %v1734_v49  ;;  %1558 = vmatpush.msk.msra.mxu1 %vm985_vm6, %v1734_v49 }
  0x61   : > { %1559 = vmatpush.msk.msrb.mxu3 %vm985_vm6, %v1734_v49 }
  0x63   : > { %1465 = vmatmul.msk.f32.gmra.mxu0 %vm424_vm0, %v410_v9  ;;  %1470 = vmatmul.msk.f32.gmra.mxu2 %vm424_vm0, %v415_v10  ;;  %v968_v9 = vadd.s32 %v2040_v39, %v951_v7  ;;  %v950_v10 = vadd.s32 64, %v2033_v35  ;;  %v959_v7 = vadd.s32 %v2040_v39, %v2033_v35 }
  0x64   : > { %1477 = vmatmul.msk.f32.gmra.mxu3 %vm424_vm0, %v422_v11 }
  0x65   : > { %vm984_vm7 = vcmp.lt.s32.totalorder %v968_v9, 200  ;;  %v967_v11 = vadd.s32 %v2040_v39, %v950_v10  ;;  %vm975_vm1 = vcmp.lt.s32.totalorder %v959_v7, 200 }
  0x66   : > { %1502 = vmatpush.msk.msrb.mxu0 %vm984_vm7, %v1734_v49  ;;  %1561 = vmatpush.msk.msrb.mxu3 %vm984_vm7, %v1734_v49 }
  0x67   : > { %vm983_vm8 = vcmp.lt.s32.totalorder %v967_v11, 200  ;;  %1560 = vmatpush.msk.msra.mxu1 %vm984_vm7, %v1734_v49 }
  0x68   : > { %1503 = vmatpush.msk.msrb.mxu0 %vm983_vm8, %v1734_v49  ;;  %1563 = vmatpush.msk.msrb.mxu3 %vm983_vm8, %v1734_v49 }
  0x69   : > { %1562 = vmatpush.msk.msra.mxu1 %vm983_vm8, %v1734_v49 }
  0x6b   : > { %1466 = vmatmul.msk.f32.gmra.mxu0 %vm424_vm0, %v411_v18  ;;  %1471 = vmatmul.msk.f32.gmra.mxu2 %vm424_vm0, %v416_v19  ;;  %v949_v18 = vadd.s32 56, %v2033_v35 }
  0x6c   : > { %1478 = vmatmul.msk.f32.gmra.mxu3 %vm424_vm0, %v423_v20  ;;  %v948_v20 = vadd.s32 48, %v2033_v35 }
  0x6d   : > { %v966_v19 = vadd.s32 %v2040_v39, %v949_v18 }
  0x6f   : > { %vm982_vm9 = vcmp.lt.s32.totalorder %v966_v19, 200 }
  0x70   : > { %1504 = vmatpush.msk.msrb.mxu0 %vm982_vm9, %v1734_v49  ;;  %1565 = vmatpush.msk.msrb.mxu3 %vm982_vm9, %v1734_v49 }
  0x71   : > { %1564 = vmatpush.msk.msra.mxu1 %vm982_vm9, %v1734_v49 }
  0x73   : > { %1467 = vmatmul.msk.f32.gmra.mxu0 %vm424_vm0, %v412_v25  ;;  %1472 = vmatmul.msk.f32.gmra.mxu2 %vm424_vm0, %v417_v26  ;;  %v965_v26 = vadd.s32 %v2040_v39, %v948_v20 }
  0x74   : > { %v2038_v38 = vpop.permute.xlu2 %622 }
  0x75   : > { %vm981_vm10 = vcmp.lt.s32.totalorder %v965_v26, 200 }
  0x76   : > { %1505 = vmatpush.msk.msrb.mxu0 %vm981_vm10, %v1734_v49  ;;  %1567 = vmatpush.msk.msrb.mxu3 %vm981_vm10, %v1734_v49 }
  0x77   : > { %1566 = vmatpush.msk.msra.mxu1 %vm981_vm10, %v1734_v49 }
  0x7b   : > { %1473 = vmatmul.msk.f32.gmra.mxu2 %vm424_vm0, %v418_v29  ;;  %v947_v29 = vadd.s32 40, %v2033_v35 }
  0x7c   : > { %v2062_v0 = vpop.permute.xlu2 %625 }
  0x7d   : > { %v964_v34 = vadd.s32 %v2040_v39, %v947_v29 }
  0x7f   : > { %vm980_vm11 = vcmp.lt.s32.totalorder %v964_v34, 200 }
  0x80   : > { %1506 = vmatpush.msk.msrb.mxu0 %vm980_vm11, %v1734_v49  ;;  %1569 = vmatpush.msk.msrb.mxu3 %vm980_vm11, %v1734_v49 }
  0x81   : > { %1568 = vmatpush.msk.msra.mxu1 %vm980_vm11, %v1734_v49  ;;  %vm658_vm11 = vcmp.eq.s32.totalorder %v2038_v38, %v2127_v6 }
  0x82   : > { %1507 = vmatpush.msk.msrb.mxu0 %vm979_vm12, %v1734_v49  ;;  %1571 = vmatpush.msk.msrb.mxu3 %vm979_vm12, %v1734_v49 }
  0x83   : > { %1474 = vmatmul.msk.f32.gmra.mxu2 %vm424_vm0, %v419_v32  ;;  %1570 = vmatpush.msk.msra.mxu1 %vm979_vm12, %v1734_v49 }
  0x84   : > { %v2091_v32 = vpop.permute.xlu2 %643  ;;  %1508 = vmatpush.msk.msrb.mxu0 %vm978_vm13, %v1734_v49  ;;  %1573 = vmatpush.msk.msrb.mxu3 %vm978_vm13, %v1734_v49 }
  0x85   : > { %1572 = vmatpush.msk.msra.mxu1 %vm978_vm13, %v1734_v49  ;;  %vm665_vm5 = vcmp.eq.s32.totalorder %v2091_v32, %v2127_v6 }
  0x86   : > { %1509 = vmatpush.msk.msrb.mxu0 %vm977_vm14, %v1734_v49  ;;  %1575 = vmatpush.msk.msrb.mxu3 %vm977_vm14, %v1734_v49 }
  0x87   : > { %v2030_v33 = vpop.permute.xlu0 %610  ;;  %1574 = vmatpush.msk.msra.mxu1 %vm977_vm14, %v1734_v49 }
  0x88   : > { %1510 = vmatpush.msk.msrb.mxu0 %vm976_vm15, %v1734_v49  ;;  %1577 = vmatpush.msk.msrb.mxu3 %vm976_vm15, %v1734_v49  ;;  %vm654_vm6 = vcmp.eq.s32.totalorder %v2030_v33, %v2127_v6 }
  0x89   : > { %1576 = vmatpush.msk.msra.mxu1 %vm976_vm15, %v1734_v49  ;;  %vm659_vm15 = vcmp.eq.s32.totalorder %v2062_v0, %v2127_v6 }
  0x8a   : > { %1511 = vmatpush.msk.msrb.mxu0 %vm975_vm1, %v1734_v49  ;;  %1579 = vmatpush.msk.msrb.mxu3 %vm975_vm1, %v1734_v49 }
  0x8b   : > { %v2099_v40 = vpop.permute.xlu1 %616  ;;  %1578 = vmatpush.msk.msra.mxu1 %vm975_vm1, %v1734_v49 }
  0x8c   : > { %v605_v63 = vpop.permute.xlu2 %604  ;;  %vm656_vm13 = vcmp.eq.s32.totalorder %v2099_v40, %v2127_v6 }
  0x8d   : > { %vm652_vm2 = vcmp.eq.s32.totalorder %v605_v63, %v2127_v6 }
  0x8f   : > { %v2035_v36 = vpop.permute.xlu0 %613 }
  0x90   : > { %vm655_vm9 = vcmp.eq.s32.totalorder %v2035_v36, %v2127_v6 }
  0x93   : > { %v620_v9 = vpop.permute.xlu1 %619 }
  0x94   : > { %v608_v19 = vpop.permute.xlu2 %607  ;;  %vm657_vm7 = vcmp.eq.s32.totalorder %v620_v9, %v2127_v6 }
  0x95   : > { %vm653_vm4 = vcmp.eq.s32.totalorder %v608_v19, %v2127_v6 }
  0x97   : > { %v2056_v60 = vpop.permute.xlu0 %628 }
  0x9b   : > { %v2146_v43 = vpop.permute.xlu1 %631 }
  0x9f   : > { %v2085_v25 = vpop.permute.xlu0 %634 }
  0xa7   : > { %v2116_v59 = vpop.permute.xlu0 %637 }
  0xaf   : > { %v641_v18 = vpop.permute.xlu0 %640 }
  0xb0   : > { %vm664_vm3 = vcmp.eq.s32.totalorder %v641_v18, %v2127_v6 }
  0xd0   : > { %v538_v10 = vpop.f32.mrf.mxu0 }
  0xd1   : > { %v668_v35 = vsub.f32 0.0, %v538_v10 }
  0xd3   : > { %v2141_v39 = vsel %vm652_vm2, %v668_v35, %v538_v10 }
  0xd4   : > { %v700_v11 = vand.u32 2147483647, %v2141_v39  ;;  %v908_v8 = vmax.f32 %v2141_v39, 0.0 }
  0xd6   : > { %v716_v20 = vsub.f32 0.0, %v700_v11  ;;  %v553_v49 = vpop.f32.mrf.mxu2 }
  0xd7   : > { %v574_v26 = vpop.f32.mrf.mxu3  ;;  %v673_v62 = vsub.f32 0.0, %v553_v49 }
  0xd8   : > { %v732_v29 = vmul.f32 1.442695, %v716_v20  ;;  %v680_v34 = vsub.f32 0.0, %v574_v26  ;;  %v541_v37 = vpop.f32.mrf.mxu0 }
  0xd9   : > { %v669_v47 = vsub.f32 0.0, %v541_v37 }
  0xda   : > { %1627 = vpow2.f32 %v732_v29  ;;  %v2148_v50 = vsel %vm664_vm3, %v680_v34, %v574_v26  ;;  %v647_v26 = vpop.permute.xlu1 %646  ;;  %v2160_v29 = vsel %vm657_vm7, %v673_v62, %v553_v49  ;;  %vm661_vm7 = vcmp.eq.s32.totalorder %v2146_v43, %v2127_v6 }
  0xdb   : > { %v2150_v51 = vsel %vm653_vm4, %v669_v47, %v541_v37  ;;  %vm666_vm8 = vcmp.eq.s32.totalorder %v647_v26, %v2127_v6  ;;  %vm660_vm4 = vcmp.eq.s32.totalorder %v2056_v60, %v2127_v6 }
  0xdc   : > { %v701_v52 = vand.u32 2147483647, %v2150_v51 }
  0xde   : > { %v717_v53 = vsub.f32 0.0, %v701_v52  ;;  %v556_v37 = vpop.f32.mrf.mxu2  ;;  %v705_v52 = vand.u32 2147483647, %v2160_v29 }
  0xdf   : > { %v577_v63 = vpop.f32.mrf.mxu3  ;;  %v674_v5 = vsub.f32 0.0, %v556_v37 }
  0xe0   : > { %v1628_v7 = vpop.eup %1627  ;;  %v734_v10 = vmul.f32 1.442695, %v717_v53  ;;  %v681_v35 = vsub.f32 0.0, %v577_v63  ;;  %v544_v11 = vpop.f32.mrf.mxu0 }
  0xe1   : > { %v670_v18 = vsub.f32 0.0, %v544_v11  ;;  %v764_v19 = vadd.f32 1.0, %v1628_v7  ;;  %v767_v9 = vmul.f32 -0.5, %v1628_v7 }
  0xe2   : > { %1629 = vpow2.f32 %v734_v10  ;;  %v2158_v20 = vsel %vm665_vm5, %v681_v35, %v577_v63  ;;  %v650_v31 = vpop.permute.xlu1 %649 }
  0xe3   : > { %v713_v32 = vand.u32 2147483647, %v2158_v20  ;;  %v2163_v34 = vsel %vm654_vm6, %v670_v18, %v544_v11  ;;  %1631 = vlog2.f32 %v764_v19  ;;  %v768_v17 = vadd.f32 1.0, %v767_v9 }
  0xe4   : > { %v702_v33 = vand.u32 2147483647, %v2163_v34  ;;  %v770_v11 = vand.u32 2147483647, %v1628_v7  ;;  %vm667_vm12 = vcmp.eq.s32.totalorder %v650_v31, %v2127_v6  ;;  %v910_v16 = vmax.f32 %v2163_v34, 0.0 }
  0xe5   : > { %v729_v47 = vsub.f32 0.0, %v713_v32 }
  0xe6   : > { %v718_v53 = vsub.f32 0.0, %v702_v33  ;;  %v721_v33 = vsub.f32 0.0, %v705_v52  ;;  %vm771_vm10 = vcmp.lt.f32.partialorder %v770_v11, 0.0004427343  ;;  %v2177_v39 = vpop.f32.mrf.mxu2 }
  0xe7   : > { %v758_v10 = vmul.f32 1.442695, %v729_v47  ;;  %v580_v63 = vpop.f32.mrf.mxu3  ;;  %v769_v47 = vmul.f32 %v1628_v7, %v768_v17 }
  0xe8   : > { %v1630_v49 = vpop.eup %1629  ;;  %v736_v62 = vmul.f32 1.442695, %v718_v53  ;;  %v682_v35 = vsub.f32 0.0, %v580_v63  ;;  %v547_v61 = vpop.f32.mrf.mxu0 }
  0xe9   : > { %v1632_v18 = vpop.eup %1631  ;;  %1633 = vpow2.f32 %v758_v10  ;;  %v671_v19 = vsub.f32 0.0, %v547_v61  ;;  %v773_v32 = vadd.f32 1.0, %v1630_v49  ;;  %v776_v36 = vmul.f32 -0.5, %v1630_v49 }
  0xea   : > { %v2171_v9 = vsel %vm666_vm8, %v682_v35, %v580_v63  ;;  %v766_v53 = vmul.f32 0.6931472, %v1632_v18 }
  0xeb   : > { %v714_v26 = vand.u32 2147483647, %v2171_v9  ;;  %v2174_v48 = vsel %vm655_vm9, %v671_v19, %v547_v61  ;;  %1635 = vlog2.f32 %v773_v32  ;;  %v777_v17 = vadd.f32 1.0, %v776_v36 }
  0xec   : > { %1637 = vpow2.f32 %v736_v62  ;;  %v703_v28 = vand.u32 2147483647, %v2174_v48  ;;  %v772_v24 = vsel %vm771_vm10, %v769_v47, %v766_v53  ;;  %v742_v61 = vmul.f32 1.442695, %v721_v33 }
  0xed   : > { %v730_v10 = vsub.f32 0.0, %v714_v26  ;;  %v924_v63 = vadd.f32 %v908_v8, %v772_v24  ;;  %v779_v32 = vand.u32 2147483647, %v1630_v49  ;;  %v909_v24 = vmax.f32 %v2150_v51, 0.0 }
  0xee   : > { %v719_v52 = vsub.f32 0.0, %v703_v28  ;;  %v2188_v33 = vsel %vm658_vm11, %v674_v5, %v556_v37  ;;  %v778_v53 = vmul.f32 %v1630_v49, %v777_v17  ;;  %vm662_vm10 = vcmp.eq.s32.totalorder %v2085_v25, %v2127_v6 }
  0xef   : > { %v1634_v7 = vpop.eup %1633  ;;  %v760_v35 = vmul.f32 1.442695, %v730_v10  ;;  %v583_v62 = vpop.f32.mrf.mxu3  ;;  %1039 = vmatmul.f32.vlgmr.msrb.gmra.mxu0 %v924_v63  ;;  %vm780_vm14 = vcmp.lt.f32.partialorder %v779_v32, 0.0004427343  ;;  %v706_v49 = vand.u32 2147483647, %v2188_v33 }
  0xf0   : > { %v738_v11 = vmul.f32 1.442695, %v719_v52  ;;  %v683_v18 = vsub.f32 0.0, %v583_v62  ;;  %v550_v19 = vpop.f32.mrf.mxu0  ;;  %v881_v47 = vadd.f32 1.0, %v1634_v7  ;;  %v884_v38 = vmul.f32 -0.5, %v1634_v7  ;;  %v562_v32 = vpop.f32.mrf.mxu2 }
  0xf1   : > { %v1636_v28 = vpop.eup %1635  ;;  %1639 = vpow2.f32 %v760_v35  ;;  %v672_v8 = vsub.f32 0.0, %v550_v19  ;;  %v887_v63 = vand.u32 2147483647, %v1634_v7 }
  0xf2   : > { %v1638_v26 = vpop.eup %1637  ;;  %1641 = vpow2.f32 %v738_v11  ;;  %v2190_v31 = vsel %vm667_vm12, %v683_v18, %v583_v62  ;;  %v775_v52 = vmul.f32 0.6931472, %v1636_v28  ;;  %v885_v11 = vadd.f32 1.0, %v884_v38 }
  0xf3   : > { %v715_v36 = vand.u32 2147483647, %v2190_v31  ;;  %v2196_v10 = vsel %vm656_vm13, %v672_v8, %v550_v19  ;;  %1643 = vlog2.f32 %v881_v47  ;;  %v782_v35 = vadd.f32 1.0, %v1638_v26 }
  0xf4   : > { %1645 = vpow2.f32 %v742_v61  ;;  %v704_v51 = vand.u32 2147483647, %v2196_v10  ;;  %v781_v37 = vsel %vm780_vm14, %v778_v53, %v775_v52  ;;  %v675_v19 = vsub.f32 0.0, %v2177_v39 }
  0xf5   : > { %v731_v5 = vsub.f32 0.0, %v715_v36  ;;  %v925_v62 = vadd.f32 %v909_v24, %v781_v37  ;;  %1647 = vlog2.f32 %v782_v35  ;;  %v886_v8 = vmul.f32 %v1634_v7, %v885_v11 }
  0xf6   : > { %v720_v17 = vsub.f32 0.0, %v704_v51  ;;  %v785_v47 = vmul.f32 -0.5, %v1638_v26  ;;  %v921_v36 = vmax.f32 %v2158_v20, 0.0  ;;  %vm888_vm1 = vcmp.lt.f32.partialorder %v887_v63, 0.0004427343 }
  0xf7   : > { %v1640_v18 = vpop.eup %1639  ;;  %v762_v40 = vmul.f32 1.442695, %v731_v5  ;;  %1042 = vmatmul.f32.gmra.mxu0 %v925_v62  ;;  %v722_v51 = vsub.f32 0.0, %v706_v49  ;;  %v788_v37 = vand.u32 2147483647, %v1638_v26  ;;  %v2212_v7 = vsel %vm659_vm15, %v675_v19, %v2177_v39 }
  0xf8   : > { %v2202_v61 = vpop.eup %1641  ;;  %v740_v28 = vmul.f32 1.442695, %v720_v17  ;;  %v890_v24 = vadd.f32 1.0, %v1640_v18  ;;  %v786_v5 = vadd.f32 1.0, %v785_v47  ;;  %v893_v35 = vmul.f32 -0.5, %v1640_v18  ;;  %v565_v34 = vpop.f32.mrf.mxu2 }
  0xf9   : > { %v1644_v53 = vpop.eup %1643  ;;  %1649 = vpow2.f32 %v762_v40  ;;  %v791_v20 = vadd.f32 1.0, %v2202_v61  ;;  %v896_v40 = vand.u32 2147483647, %v1640_v18  ;;  %v794_v49 = vmul.f32 -0.5, %v2202_v61 }
  0xfa   : > { %v2206_v52 = vpop.eup %1645  ;;  %1651 = vpow2.f32 %v740_v28  ;;  %v883_v38 = vmul.f32 0.6931472, %v1644_v53  ;;  %v894_v11 = vadd.f32 1.0, %v893_v35  ;;  %v744_v28 = vmul.f32 1.442695, %v722_v51 }
  0xfb   : > { %1653 = vlog2.f32 %v890_v24  ;;  %v1648_v63 = vpop.eup %1647  ;;  %v787_v53 = vmul.f32 %v1638_v26, %v786_v5  ;;  %v707_v0 = vand.u32 2147483647, %v2212_v7  ;;  %v676_v39 = vsub.f32 0.0, %v562_v32 }
  0xfc   : > { %v889_v17 = vsel %vm888_vm1, %v886_v8, %v883_v38  ;;  %v784_v47 = vmul.f32 0.6931472, %v1648_v63  ;;  %1655 = vlog2.f32 %v791_v20  ;;  %vm789_vm2 = vcmp.lt.f32.partialorder %v788_v37, 0.0004427343 }
  0xfd   : > { %v937_v62 = vadd.f32 %v921_v36, %v889_v17  ;;  %v895_v38 = vmul.f32 %v1640_v18, %v894_v11  ;;  %v795_v36 = vadd.f32 1.0, %v794_v49  ;;  %vm2218_vm3 = vcmp.lt.f32.partialorder %v896_v40, 0.0004427343 }
  0xfe   : > { %v790_v8 = vsel %vm789_vm2, %v787_v53, %v784_v47  ;;  %v797_v20 = vand.u32 2147483647, %v2202_v61  ;;  %v922_v18 = vmax.f32 %v2171_v9, 0.0  ;;  %v2227_v11 = vsel %vm660_vm4, %v676_v39, %v562_v32 }
  0xff   : > { %v1650_v24 = vpop.eup %1649  ;;  %1078 = vmatmul.f32.vlgmr.msrb.gmra.mxu3 %v937_v62  ;;  %v926_v58 = vadd.f32 %v910_v16, %v790_v8  ;;  %v809_v16 = vadd.f32 1.0, %v2206_v52  ;;  %v723_v62 = vsub.f32 0.0, %v707_v0  ;;  %v796_v60 = vmul.f32 %v2202_v61, %v795_v36 }
 0x100   : > { %v1652_v19 = vpop.eup %1651  ;;  %v899_v35 = vadd.f32 1.0, %v1650_v24  ;;  %v902_v26 = vmul.f32 -0.5, %v1650_v24  ;;  %vm798_vm5 = vcmp.lt.f32.partialorder %v797_v20, 0.0004427343  ;;  %v905_v9 = vand.u32 2147483647, %v1650_v24 }
 0x101   : > { %v1654_v17 = vpop.eup %1653  ;;  %1045 = vmatmul.f32.vlgmr.msra.gmra.mxu1 %v926_v58  ;;  %v800_v37 = vadd.f32 1.0, %v1652_v19  ;;  %v803_v8 = vmul.f32 -0.5, %v1652_v19  ;;  %v911_v58 = vmax.f32 %v2174_v48, 0.0  ;;  %v746_v0 = vmul.f32 1.442695, %v723_v62 }
 0x102   : > { %v892_v5 = vmul.f32 0.6931472, %v1654_v17  ;;  %1657 = vlog2.f32 %v899_v35  ;;  %v1656_v63 = vpop.eup %1655  ;;  %v903_v53 = vadd.f32 1.0, %v902_v26  ;;  %v708_v32 = vand.u32 2147483647, %v2227_v11 }
 0x103   : > { %1659 = vpow2.f32 %v744_v28  ;;  %v793_v47 = vmul.f32 0.6931472, %v1656_v63  ;;  %v677_v17 = vsub.f32 0.0, %v565_v34  ;;  %v804_v51 = vadd.f32 1.0, %v803_v8 }
 0x104   : > { %v898_v40 = vsel %vm2218_vm3, %v895_v38, %v892_v5  ;;  %1661 = vlog2.f32 %v800_v37  ;;  %v904_v36 = vmul.f32 %v1650_v24, %v903_v53  ;;  %vm906_vm6 = vcmp.lt.f32.partialorder %v905_v9, 0.0004427343 }
 0x105   : > { %v938_v49 = vadd.f32 %v922_v18, %v898_v40  ;;  %v799_v28 = vsel %vm798_vm5, %v796_v60, %v793_v47  ;;  %1663 = vlog2.f32 %v809_v16  ;;  %v923_v26 = vmax.f32 %v2190_v31, 0.0  ;;  %v568_v16 = vpop.f32.mrf.mxu2 }
 0x106   : > { %v927_v39 = vadd.f32 %v911_v58, %v799_v28  ;;  %v806_v48 = vand.u32 2147483647, %v1652_v19  ;;  %v812_v5 = vmul.f32 -0.5, %v2206_v52  ;;  %1665 = vpow2.f32 %v746_v0 }
 0x107   : > { %1081 = vmatmul.f32.gmra.mxu3 %v938_v49  ;;  %v724_v37 = vsub.f32 0.0, %v708_v32  ;;  %v2238_v62 = vsel %vm661_vm7, %v677_v17, %v565_v34  ;;  %v805_v40 = vmul.f32 %v1652_v19, %v804_v51  ;;  %v912_v31 = vmax.f32 %v2196_v10, 0.0 }
 0x108   : > { %v1658_v35 = vpop.eup %1657  ;;  %vm807_vm8 = vcmp.lt.f32.partialorder %v806_v48, 0.0004427343  ;;  %v813_v47 = vadd.f32 1.0, %v812_v5  ;;  %v815_v8 = vand.u32 2147483647, %v2206_v52  ;;  %v678_v28 = vsub.f32 0.0, %v568_v16 }
 0x109   : > { %v1660_v38 = vpop.eup %1659  ;;  %v901_v61 = vmul.f32 0.6931472, %v1658_v35  ;;  %1048 = vmatmul.f32.gmra.mxu1 %v927_v39  ;;  %v748_v58 = vmul.f32 1.442695, %v724_v37  ;;  %v709_v43 = vand.u32 2147483647, %v2238_v62  ;;  %vm663_vm12 = vcmp.eq.s32.totalorder %v2116_v59, %v2127_v6 }
 0x10a   : > { %v1662_v18 = vpop.eup %1661  ;;  %v818_v60 = vadd.f32 1.0, %v1660_v38  ;;  %v814_v19 = vmul.f32 %v2206_v52, %v813_v47  ;;  %v821_v0 = vmul.f32 -0.5, %v1660_v38  ;;  %vm816_vm9 = vcmp.lt.f32.partialorder %v815_v8, 0.0004427343 }
 0x10b   : > { %v907_v20 = vsel %vm906_vm6, %v904_v36, %v901_v61  ;;  %v802_v24 = vmul.f32 0.6931472, %v1662_v18  ;;  %v1664_v49 = vpop.eup %1663  ;;  %v725_v10 = vsub.f32 0.0, %v709_v43  ;;  %v2246_v32 = vsel %vm662_vm10, %v678_v28, %v568_v16 }
 0x10c   : > { %v939_v63 = vadd.f32 %v923_v26, %v907_v20  ;;  %1667 = vlog2.f32 %v818_v60  ;;  %v1666_v34 = vpop.eup %1665  ;;  %v811_v35 = vmul.f32 0.6931472, %v1664_v49  ;;  %v913_v39 = vmax.f32 %v2160_v29, 0.0 }
 0x10d   : > { %v808_v53 = vsel %vm807_vm8, %v805_v40, %v802_v24  ;;  %1669 = vpow2.f32 %v748_v58  ;;  %v827_v17 = vadd.f32 1.0, %v1666_v34  ;;  %v571_v61 = vpop.f32.mrf.mxu2  ;;  %v822_v51 = vadd.f32 1.0, %v821_v0 }
 0x10e   : > { %v928_v9 = vadd.f32 %v912_v31, %v808_v53  ;;  %v817_v36 = vsel %vm816_vm9, %v814_v19, %v811_v35  ;;  %v824_v48 = vand.u32 2147483647, %v1660_v38  ;;  %v750_v5 = vmul.f32 1.442695, %v725_v10 }
 0x10f   : > { %1084 = vmatmul.f32.gmra.mxu3 %v939_v63  ;;  %v710_v52 = vand.u32 2147483647, %v2246_v32  ;;  %v679_v20 = vsub.f32 0.0, %v571_v61  ;;  %v929_v18 = vadd.f32 %v913_v39, %v817_v36  ;;  %1671 = vlog2.f32 %v827_v17 }
 0x110   : > { %v823_v63 = vmul.f32 %v1660_v38, %v822_v51  ;;  %v830_v24 = vmul.f32 -0.5, %v1666_v34  ;;  %vm825_vm11 = vcmp.lt.f32.partialorder %v824_v48, 0.0004427343  ;;  %1673 = vpow2.f32 %v750_v5 }
 0x111   : > { %1051 = vmatmul.f32.gmra.mxu1 %v928_v9  ;;  %v726_v29 = vsub.f32 0.0, %v710_v52  ;;  %v914_v16 = vmax.f32 %v2188_v33, 0.0  ;;  %v2253_v40 = vsel %vm663_vm12, %v679_v20, %v571_v61  ;;  %v833_v53 = vand.u32 2147483647, %v1666_v34 }
 0x112   : > { %v1668_v26 = vpop.eup %1667  ;;  %v831_v31 = vadd.f32 1.0, %v830_v24  ;;  %v711_v38 = vand.u32 2147483647, %v2253_v40  ;;  %v915_v33 = vmax.f32 %v2212_v7, 0.0  ;;  %v712_v10 = vand.u32 2147483647, %v2148_v50 }
 0x113   : > { %v1670_v37 = vpop.eup %1669  ;;  %v820_v25 = vmul.f32 0.6931472, %v1668_v26  ;;  %v752_v8 = vmul.f32 1.442695, %v726_v29  ;;  %vm834_vm13 = vcmp.lt.f32.partialorder %v833_v53, 0.0004427343 }
 0x114   : > { %v836_v60 = vadd.f32 1.0, %v1670_v37  ;;  %v832_v28 = vmul.f32 %v1666_v34, %v831_v31  ;;  %v727_v59 = vsub.f32 0.0, %v711_v38  ;;  %v839_v6 = vmul.f32 -0.5, %v1670_v37 }
 0x115   : > { %v826_v49 = vsel %vm825_vm11, %v823_v63, %v820_v25  ;;  %v1672_v47 = vpop.eup %1671  ;;  %v842_v36 = vand.u32 2147483647, %v1670_v37  ;;  %v728_v34 = vsub.f32 0.0, %v712_v10 }
 0x116   : > { %v930_v58 = vadd.f32 %v914_v16, %v826_v49  ;;  %1675 = vlog2.f32 %v836_v60  ;;  %v1674_v43 = vpop.eup %1673  ;;  %v829_v9 = vmul.f32 0.6931472, %v1672_v47  ;;  %v754_v39 = vmul.f32 1.442695, %v727_v59 }
 0x117   : > { %1677 = vpow2.f32 %v752_v8  ;;  %v845_v35 = vadd.f32 1.0, %v1674_v43  ;;  %v840_v17 = vadd.f32 1.0, %v839_v6  ;;  %v848_v5 = vmul.f32 -0.5, %v1674_v43 }
 0x118   : > { %v835_v19 = vsel %vm834_vm13, %v832_v28, %v829_v9  ;;  %vm843_vm14 = vcmp.lt.f32.partialorder %v842_v36, 0.0004427343  ;;  %v756_v25 = vmul.f32 1.442695, %v728_v34  ;;  %v851_v29 = vand.u32 2147483647, %v1674_v43 }
 0x119   : > { %1054 = vmatmul.f32.gmra.mxu1 %v929_v18  ;;  %v931_v61 = vadd.f32 %v915_v33, %v835_v19  ;;  %1679 = vlog2.f32 %v845_v35  ;;  %v841_v48 = vmul.f32 %v1670_v37, %v840_v17  ;;  %v916_v18 = vmax.f32 %v2227_v11, 0.0 }
 0x11a   : > { %1681 = vpow2.f32 %v754_v39  ;;  %v849_v63 = vadd.f32 1.0, %v848_v5  ;;  %vm852_vm15 = vcmp.lt.f32.partialorder %v851_v29, 0.0004427343  ;;  %v917_v8 = vmax.f32 %v2238_v62, 0.0 }
 0x11b   : > { %v918_v19 = vmax.f32 %v2246_v32, 0.0 }
 0x11c   : > { %v1676_v0 = vpop.eup %1675  ;;  %v850_v49 = vmul.f32 %v1674_v43, %v849_v63 }
 0x11d   : > { %v1678_v51 = vpop.eup %1677  ;;  %v838_v26 = vmul.f32 0.6931472, %v1676_v0 }
 0x11e   : > { %v854_v52 = vadd.f32 1.0, %v1678_v51  ;;  %v857_v31 = vmul.f32 -0.5, %v1678_v51  ;;  %v860_v11 = vand.u32 2147483647, %v1678_v51 }
 0x11f   : > { %v844_v7 = vsel %vm843_vm14, %v841_v48, %v838_v26  ;;  %v1680_v20 = vpop.eup %1679 }
 0x120   : > { %v932_v24 = vadd.f32 %v916_v18, %v844_v7  ;;  %1683 = vlog2.f32 %v854_v52  ;;  %v1682_v16 = vpop.eup %1681  ;;  %v847_v60 = vmul.f32 0.6931472, %v1680_v20  ;;  %v858_v38 = vadd.f32 1.0, %v857_v31 }
 0x121   : > { %1057 = vmatmul.f32.gmra.mxu1 %v930_v58  ;;  %1685 = vpow2.f32 %v756_v25  ;;  %v863_v37 = vadd.f32 1.0, %v1682_v16  ;;  %v866_v6 = vmul.f32 -0.5, %v1682_v16  ;;  %vm861_vm1 = vcmp.lt.f32.partialorder %v860_v11, 0.0004427343 }
 0x122   : > { %v853_v47 = vsel %vm852_vm15, %v850_v49, %v847_v60  ;;  %v859_v59 = vmul.f32 %v1678_v51, %v858_v38  ;;  %v869_v39 = vand.u32 2147483647, %v1682_v16  ;;  %v919_v51 = vmax.f32 %v2253_v40, 0.0 }
 0x123   : > { %v933_v58 = vadd.f32 %v917_v8, %v853_v47  ;;  %1687 = vlog2.f32 %v863_v37  ;;  %v867_v0 = vadd.f32 1.0, %v866_v6  ;;  %v920_v20 = vmax.f32 %v2148_v50, 0.0 }
 0x124   : > { %vm870_vm2 = vcmp.lt.f32.partialorder %v869_v39, 0.0004427343 }
 0x126   : > { %v1684_v53 = vpop.eup %1683 }
 0x127   : > { %v1686_v9 = vpop.eup %1685  ;;  %v856_v28 = vmul.f32 0.6931472, %v1684_v53 }
 0x128   : > { %v872_v33 = vadd.f32 1.0, %v1686_v9  ;;  %v875_v17 = vmul.f32 -0.5, %v1686_v9  ;;  %v878_v48 = vand.u32 2147483647, %v1686_v9 }
 0x129   : > { %1060 = vmatmul.f32.gmra.mxu1 %v931_v61  ;;  %v862_v35 = vsel %vm861_vm1, %v859_v59, %v856_v28  ;;  %v1688_v43 = vpop.eup %1687  ;;  %v868_v61 = vmul.f32 %v1682_v16, %v867_v0 }
 0x12a   : > { %v934_v10 = vadd.f32 %v918_v19, %v862_v35  ;;  %1689 = vlog2.f32 %v872_v33  ;;  %v865_v62 = vmul.f32 0.6931472, %v1688_v43  ;;  %v876_v26 = vadd.f32 1.0, %v875_v17 }
 0x12b   : > { %vm879_vm3 = vcmp.lt.f32.partialorder %v878_v48, 0.0004427343 }
 0x12c   : > { %v871_v36 = vsel %vm870_vm2, %v868_v61, %v865_v62  ;;  %v877_v7 = vmul.f32 %v1686_v9, %v876_v26 }
 0x12d   : > { %v935_v5 = vadd.f32 %v919_v51, %v871_v36 }
 0x130   : > { %v1690_v34 = vpop.eup %1689 }
 0x131   : > { %1063 = vmatmul.f32.gmra.mxu1 %v932_v24  ;;  %v874_v52 = vmul.f32 0.6931472, %v1690_v34 }
 0x133   : > { %v880_v32 = vsel %vm879_vm3, %v877_v7, %v874_v52 }
 0x134   : > { %v936_v18 = vadd.f32 %v920_v20, %v880_v32 }
 0x139   : > { %1066 = vmatmul.f32.gmra.mxu1 %v933_v58 }
 0x141   : > { %1069 = vmatmul.f32.gmra.mxu1 %v934_v10 }
 0x149   : > { %1072 = vmatmul.f32.gmra.mxu1 %v935_v5 }
 0x151   : > { %1075 = vmatmul.f32.gmra.mxu1 %v936_v18 }
 0x16c   : > { %v2263_v25 = vpop.f32.mrf.mxu0 }
 0x174   : > { %v2265_v63 = vpop.f32.mrf.mxu0 }
 0x17e   : > { %v2267_v24 = vpop.f32.mrf.mxu1 }
 0x182   : > { %v2269_v29 = vpop.f32.mrf.mxu3 }
 0x186   : > { %v2271_v40 = vpop.f32.mrf.mxu1 }
 0x18a   : > { %v2273_v16 = vpop.f32.mrf.mxu3 }
 0x18e   : > { %v2275_v60 = vpop.f32.mrf.mxu1 }
 0x192   : > { %v2277_v49 = vpop.f32.mrf.mxu3 }
 0x196   : > { %v2279_v31 = vpop.f32.mrf.mxu1 }
 0x19e   : > { %v2281_v50 = vpop.f32.mrf.mxu1 }
 0x1a6   : > { %v2283_v37 = vpop.f32.mrf.mxu1 }
 0x1ae   : > { %v2285_v47 = vpop.f32.mrf.mxu1 }
 0x1b6   : > { %v2287_v53 = vpop.f32.mrf.mxu1 }
 0x1be   : > { %v2289_v8 = vpop.f32.mrf.mxu1 }
 0x1c6   : > { %v2291_v38 = vpop.f32.mrf.mxu1 }
 0x1ca   : > { %1091 = sbr.rel (%p1512_p8) target bundleno = 625 (0x271), region = 40 }
 0x1ce   : > { %v2293_v58 = vpop.f32.mrf.mxu1 }
 0x1cf   : > { %v1109_v11 = vsel %vm424_vm0, %v1415_v45, 0.0  ;;  %v1121_v9 = vsel %vm424_vm0, %v1419_v23, 0.0  ;;  %v1115_v28 = vsel %vm424_vm0, %v1417_v4, 0.0  ;;  %v1112_v59 = vsel %vm424_vm0, %v1416_v57, 0.0 }
 0x1d0   : > { %1110 = vadd.xlane.f32.xlu0 %v1109_v11  ;;  %1122 = vadd.xlane.f32.xlu2 %v1121_v9  ;;  %v1124_v41 = vsel %vm424_vm0, %v1420_v46, 0.0  ;;  %v1118_v45 = vsel %vm424_vm0, %v1418_v15, 0.0  ;;  %v2522_v1 = vclamps-f32 %v1935_v55, 1.0  ;;  %v2523_v21 = vclamps-f32 %v1982_v13, 1.0 }
 0x1d1   : > { %1116 = vadd.xlane.f32.xlu1 %v1115_v28  ;;  %v2524_v57 = vclamps-f32 %v1959_v2, 1.0  ;;  %v2525_v46 = vclamps-f32 %v2003_v22, 1.0  ;;  %v2526_v55 = vclamps-f32 %v2023_v30, 1.0  ;;  %v2527_v13 = vclamps-f32 %v2015_v27, 1.0 }
 0x1d2   : > { %v1127_v4 = vsel %vm424_vm0, %v2522_v1, 0.0  ;;  %v1133_v54 = vsel %vm424_vm0, %v2523_v21, 0.0  ;;  %v2528_v23 = vclamps-f32 %v1913_v44, 1.0  ;;  %v2529_v6 = vclamps-f32 %v1962_v3, 1.0 }
 0x1d3   : > { %v1130_v42 = vsel %vm424_vm0, %v2524_v57, 0.0  ;;  %v1136_v12 = vsel %vm424_vm0, %v2525_v46, 0.0  ;;  %v1142_v15 = vsel %vm424_vm0, %v2526_v55, 0.0  ;;  %v1139_v2 = vsel %vm424_vm0, %v2527_v13, 0.0 }
 0x1d4   : > { %v1145_v22 = vsel %vm424_vm0, %v2528_v23, 0.0  ;;  %v1151_v30 = vsel %vm424_vm0, %v2529_v6, 0.0  ;;  %v2530_v33 = vclamps-f32 %v1939_v56, 1.0  ;;  %v2531_v44 = vclamps-f32 %v1985_v14, 1.0 }
 0x1d5   : > { %vm1092_vm4 = vcmask 7168   ;;  %v1735_v56 = vmov 32.0  }
 0x1d6   : > { %v1148_v27 = vsel %vm424_vm0, %v2530_v33, 0.0  ;;  %v1154_v35 = vsel %vm424_vm0, %v2531_v44, 0.0  ;;  %1093 = vst.msk [vmem:[%s1813_s9] sm:$0xff] %vm1092_vm4, %v2263_v25  ;;  %1691 = vrcp.f32 %v1735_v56 }
 0x1d7   : > { %1094 = vst.msk [vmem:[%s1813_s9 + $0x8] sm:$0xff] %vm1092_vm4, %v2265_v63 }
 0x1d8   : > { %1113 = vadd.xlane.f32.xlu0 %v1112_v59  ;;  %1125 = vadd.xlane.f32.xlu2 %v1124_v41  ;;  %1095 = vst.msk [vmem:[%s1813_s9 + $0x10] sm:$0xff] %vm1092_vm4, %v2267_v24 }
 0x1d9   : > { %1119 = vadd.xlane.f32.xlu1 %v1118_v45  ;;  %1096 = vst.msk [vmem:[%s1813_s9 + $0x18] sm:$0xff] %vm1092_vm4, %v2271_v40 }
 0x1da   : > { %1097 = vst.msk [vmem:[%s1813_s9 + $0x20] sm:$0xff] %vm1092_vm4, %v2275_v60 }
 0x1db   : > { %1098 = vst.msk [vmem:[%s1813_s9 + $0x28] sm:$0xff] %vm1092_vm4, %v2279_v31 }
 0x1dc   : > { %1099 = vst.msk [vmem:[%s1813_s9 + $0x30] sm:$0xff] %vm1092_vm4, %v2281_v50  ;;  %v1692_v3 = vpop.eup %1691 }
 0x1dd   : > { %1100 = vst.msk [vmem:[%s1813_s9 + $0x38] sm:$0xff] %vm1092_vm4, %v2283_v37  ;;  %v1158_v14 = vmul.f32 32.0, %v1692_v3  ;;  %vm1162_vm0 = vweird.f32 %v1692_v3 }
 0x1de   : > { %1101 = vst.msk [vmem:[%s1813_s9 + $0x40] sm:$0xff] %vm1092_vm4, %v2285_v47 }
 0x1df   : > { %1102 = vst.msk [vmem:[%s1813_s9 + $0x48] sm:$0xff] %vm1092_vm4, %v2287_v53  ;;  %v1159_v43 = vsub.f32 1.0, %v1158_v14 }
 0x1e0   : > { %1128 = vadd.xlane.f32.xlu0 %v1127_v4  ;;  %1134 = vadd.xlane.f32.xlu2 %v1133_v54  ;;  %1103 = vst.msk [vmem:[%s1813_s9 + $0x50] sm:$0xff] %vm1092_vm4, %v2289_v8 }
 0x1e1   : > { %1131 = vadd.xlane.f32.xlu1 %v1130_v42  ;;  %1104 = vst.msk [vmem:[%s1813_s9 + $0x58] sm:$0xff] %vm1092_vm4, %v2291_v38  ;;  %v1160_v19 = vmul.f32 %v1692_v3, %v1159_v43 }
 0x1e2   : > { %1105 = vst.msk [vmem:[%s1813_s9 + $0x60] sm:$0xff] %vm1092_vm4, %v2293_v58 }
 0x1e3   : > { %1106 = vst.msk [vmem:[%s1813_s9 + $0x68] sm:$0xff] %vm1092_vm4, %v2269_v29  ;;  %v1161_v0 = vadd.f32 %v1692_v3, %v1160_v19 }
 0x1e4   : > { %1107 = vst.msk [vmem:[%s1813_s9 + $0x70] sm:$0xff] %vm1092_vm4, %v2273_v16 }
 0x1e5   : > { %1108 = vst.msk [vmem:[%s1813_s9 + $0x78] sm:$0xff] %vm1092_vm4, %v2277_v49  ;;  %v1163_v10 = vsel %vm1162_vm0, %v1692_v3, %v1161_v0 }
 0x1e8   : > { %1137 = vadd.xlane.f32.xlu0 %v1136_v12  ;;  %1143 = vadd.xlane.f32.xlu2 %v1142_v15 }
 0x1e9   : > { %1140 = vadd.xlane.f32.xlu1 %v1139_v2 }
 0x1f0   : > { %1146 = vadd.xlane.f32.xlu0 %v1145_v22  ;;  %1152 = vadd.xlane.f32.xlu2 %v1151_v30 }
 0x1f1   : > { %1149 = vadd.xlane.f32.xlu1 %v1148_v27 }
 0x1f8   : > { %1155 = vadd.xlane.f32.xlu0 %v1154_v35 }
 0x243   : > { %v1111_v39 = vpop.xlane.xlu0 %1110  ;;  %v1123_v62 = vpop.xlane.xlu2 %1122 }
 0x244   : > { %v1164_v17 = vmul.f32 %v1163_v10, %v1111_v39  ;;  %v1168_v61 = vmul.f32 %v1163_v10, %v1123_v62  ;;  %v1117_v36 = vpop.xlane.xlu1 %1116 }
 0x245   : > { %v1166_v26 = vmul.f32 %v1163_v10, %v1117_v36 }
 0x246   : > { %v1180_v34 = vmul.f32 %v1164_v17, %v1164_v17  ;;  %v1184_v51 = vmul.f32 %v1168_v61, %v1168_v61 }
 0x247   : > { %v1182_v48 = vmul.f32 %v1166_v26, %v1166_v26 }
 0x248   : > { %1196 = vst.msk [vmem:[%s1819_s12] sm:$0xff] %vm1092_vm4, %v1180_v34 }
 0x249   : > { %1200 = vst.msk [vmem:[%s1819_s12 + $0x20] sm:$0xff] %vm1092_vm4, %v1184_v51 }
 0x24a   : > { %1198 = vst.msk [vmem:[%s1819_s12 + $0x10] sm:$0xff] %vm1092_vm4, %v1182_v48 }
 0x24b   : > { %v1114_v5 = vpop.xlane.xlu0 %1113  ;;  %v1126_v52 = vpop.xlane.xlu2 %1125 }
 0x24c   : > { %v1165_v7 = vmul.f32 %v1163_v10, %v1114_v5  ;;  %v1169_v32 = vmul.f32 %v1163_v10, %v1126_v52  ;;  %v1120_v20 = vpop.xlane.xlu1 %1119 }
 0x24d   : > { %v1167_v18 = vmul.f32 %v1163_v10, %v1120_v20 }
 0x24e   : > { %v1181_v11 = vmul.f32 %v1165_v7, %v1165_v7  ;;  %v1185_v9 = vmul.f32 %v1169_v32, %v1169_v32 }
 0x24f   : > { %v1183_v28 = vmul.f32 %v1167_v18, %v1167_v18 }
 0x250   : > { %1197 = vst.msk [vmem:[%s1819_s12 + $0x8] sm:$0xff] %vm1092_vm4, %v1181_v11 }
 0x251   : > { %1201 = vst.msk [vmem:[%s1819_s12 + $0x28] sm:$0xff] %vm1092_vm4, %v1185_v9 }
 0x252   : > { %1199 = vst.msk [vmem:[%s1819_s12 + $0x18] sm:$0xff] %vm1092_vm4, %v1183_v28 }
 0x253   : > { %v1129_v59 = vpop.xlane.xlu0 %1128  ;;  %v1135_v41 = vpop.xlane.xlu2 %1134 }
 0x254   : > { %v1170_v45 = vmul.f32 %v1163_v10, %v1129_v59  ;;  %v1172_v1 = vmul.f32 %v1163_v10, %v1135_v41  ;;  %v1132_v4 = vpop.xlane.xlu1 %1131 }
 0x255   : > { %v1171_v21 = vmul.f32 %v1163_v10, %v1132_v4 }
 0x256   : > { %v1186_v54 = vmul.f32 %v1170_v45, %v1170_v45  ;;  %v1188_v57 = vmul.f32 %v1172_v1, %v1172_v1 }
 0x257   : > { %v1187_v42 = vmul.f32 %v1171_v21, %v1171_v21 }
 0x258   : > { %1202 = vst.msk [vmem:[%s1819_s12 + $0x30] sm:$0xff] %vm1092_vm4, %v1186_v54 }
 0x259   : > { %1204 = vst.msk [vmem:[%s1819_s12 + $0x40] sm:$0xff] %vm1092_vm4, %v1188_v57 }
 0x25a   : > { %1203 = vst.msk [vmem:[%s1819_s12 + $0x38] sm:$0xff] %vm1092_vm4, %v1187_v42 }
 0x25b   : > { %v1138_v46 = vpop.xlane.xlu0 %1137  ;;  %v1144_v12 = vpop.xlane.xlu2 %1143 }
 0x25c   : > { %v1173_v55 = vmul.f32 %v1163_v10, %v1138_v46  ;;  %v1175_v15 = vmul.f32 %v1163_v10, %v1144_v12  ;;  %v1141_v13 = vpop.xlane.xlu1 %1140 }
 0x25d   : > { %v1174_v2 = vmul.f32 %v1163_v10, %v1141_v13 }
 0x25e   : > { %v1189_v23 = vmul.f32 %v1173_v55, %v1173_v55  ;;  %v1191_v22 = vmul.f32 %v1175_v15, %v1175_v15 }
 0x25f   : > { %v1190_v6 = vmul.f32 %v1174_v2, %v1174_v2 }
 0x260   : > { %1205 = vst.msk [vmem:[%s1819_s12 + $0x48] sm:$0xff] %vm1092_vm4, %v1189_v23 }
 0x261   : > { %1207 = vst.msk [vmem:[%s1819_s12 + $0x58] sm:$0xff] %vm1092_vm4, %v1191_v22 }
 0x262   : > { %1206 = vst.msk [vmem:[%s1819_s12 + $0x50] sm:$0xff] %vm1092_vm4, %v1190_v6 }
 0x263   : > { %v1147_v30 = vpop.xlane.xlu0 %1146  ;;  %v1153_v33 = vpop.xlane.xlu2 %1152 }
 0x264   : > { %v1176_v27 = vmul.f32 %v1163_v10, %v1147_v30  ;;  %v1178_v44 = vmul.f32 %v1163_v10, %v1153_v33  ;;  %v1150_v35 = vpop.xlane.xlu1 %1149 }
 0x265   : > { %v1177_v56 = vmul.f32 %v1163_v10, %v1150_v35 }
 0x266   : > { %v1192_v3 = vmul.f32 %v1176_v27, %v1176_v27  ;;  %v1194_v14 = vmul.f32 %v1178_v44, %v1178_v44 }
 0x267   : > { %v1193_v43 = vmul.f32 %v1177_v56, %v1177_v56 }
 0x268   : > { %1208 = vst.msk [vmem:[%s1819_s12 + $0x60] sm:$0xff] %vm1092_vm4, %v1192_v3 }
 0x269   : > { %1210 = vst.msk [vmem:[%s1819_s12 + $0x70] sm:$0xff] %vm1092_vm4, %v1194_v14 }
 0x26a   : > { %1209 = vst.msk [vmem:[%s1819_s12 + $0x68] sm:$0xff] %vm1092_vm4, %v1193_v43 }
 0x26b   : > { %v1156_v19 = vpop.xlane.xlu0 %1155 }
 0x26c   : > { %v1179_v0 = vmul.f32 %v1163_v10, %v1156_v19 }
 0x26e   : > { %v1195_v39 = vmul.f32 %v1179_v0, %v1179_v0 }
 0x270   : > { %1211 = vst.msk [vmem:[%s1819_s12 + $0x78] sm:$0xff] %vm1092_vm4, %v1195_v39 }
 0x271 PF: > { %p1513_p9 = scmp.le.s32.totalorder %s1715_s18, 0 }
 0x273   : > { %1215 = sbr.rel (%p1513_p9) target bundleno = 651 (0x28b), region = 44 }
 0x278   : > { %v1216_v62 = vld [vmem:[%s1813_s9] sm:$0xff]  ;;  %vm1248_vm5 = vcmask 7168   ;;  %v1217_v10 = vld [vmem:[%s1813_s9 + $0x8] sm:$0xff]  ;;  %v1218_v17 = vld [vmem:[%s1813_s9 + $0x10] sm:$0xff] }
 0x279   : > { %v1232_v61 = vadd.f32 %v1216_v62, %v2263_v25  ;;  %v1233_v36 = vadd.f32 %v1217_v10, %v2265_v63  ;;  %v1234_v26 = vadd.f32 %v1218_v17, %v2267_v24  ;;  %v1219_v34 = vld [vmem:[%s1813_s9 + $0x18] sm:$0xff]  ;;  %v1220_v51 = vld [vmem:[%s1813_s9 + $0x20] sm:$0xff]  ;;  %v1221_v48 = vld [vmem:[%s1813_s9 + $0x28] sm:$0xff] }
 0x27a   : > { %v1235_v5 = vadd.f32 %v1219_v34, %v2271_v40  ;;  %v1222_v52 = vld [vmem:[%s1813_s9 + $0x30] sm:$0xff]  ;;  %v1236_v25 = vadd.f32 %v1220_v51, %v2275_v60  ;;  %v1223_v7 = vld [vmem:[%s1813_s9 + $0x38] sm:$0xff]  ;;  %v1237_v63 = vadd.f32 %v1221_v48, %v2279_v31  ;;  %v1224_v24 = vld [vmem:[%s1813_s9 + $0x40] sm:$0xff] }
 0x27b   : > { %1249 = vst.msk [vmem:[%s1813_s9] sm:$0xff] %vm1248_vm5, %v1232_v61  ;;  %v1238_v40 = vadd.f32 %v1222_v52, %v2281_v50  ;;  %v1225_v32 = vld [vmem:[%s1813_s9 + $0x48] sm:$0xff]  ;;  %v1239_v60 = vadd.f32 %v1223_v7, %v2283_v37  ;;  %v1226_v20 = vld [vmem:[%s1813_s9 + $0x50] sm:$0xff]  ;;  %v1240_v31 = vadd.f32 %v1224_v24, %v2285_v47  ;;  %v1227_v18 = vld [vmem:[%s1813_s9 + $0x58] sm:$0xff] }
 0x27c   : > { %1250 = vst.msk [vmem:[%s1813_s9 + $0x8] sm:$0xff] %vm1248_vm5, %v1233_v36  ;;  %v1241_v50 = vadd.f32 %v1225_v32, %v2287_v53  ;;  %v1228_v11 = vld [vmem:[%s1813_s9 + $0x60] sm:$0xff]  ;;  %v1242_v37 = vadd.f32 %v1226_v20, %v2289_v8  ;;  %v1229_v9 = vld [vmem:[%s1813_s9 + $0x68] sm:$0xff]  ;;  %v1243_v47 = vadd.f32 %v1227_v18, %v2291_v38  ;;  %v1230_v28 = vld [vmem:[%s1813_s9 + $0x70] sm:$0xff] }
 0x27d   : > { %1251 = vst.msk [vmem:[%s1813_s9 + $0x10] sm:$0xff] %vm1248_vm5, %v1234_v26  ;;  %v1244_v59 = vadd.f32 %v1228_v11, %v2293_v58  ;;  %v1231_v53 = vld [vmem:[%s1813_s9 + $0x78] sm:$0xff]  ;;  %v1245_v41 = vadd.f32 %v1229_v9, %v2269_v29  ;;  %v1246_v8 = vadd.f32 %v1230_v28, %v2273_v16 }
 0x27e   : > { %1252 = vst.msk [vmem:[%s1813_s9 + $0x18] sm:$0xff] %vm1248_vm5, %v1235_v5  ;;  %v1247_v45 = vadd.f32 %v1231_v53, %v2277_v49 }
 0x27f   : > { %1253 = vst.msk [vmem:[%s1813_s9 + $0x20] sm:$0xff] %vm1248_vm5, %v1236_v25 }
 0x280   : > { %1254 = vst.msk [vmem:[%s1813_s9 + $0x28] sm:$0xff] %vm1248_vm5, %v1237_v63 }
 0x281   : > { %1255 = vst.msk [vmem:[%s1813_s9 + $0x30] sm:$0xff] %vm1248_vm5, %v1238_v40 }
 0x282   : > { %1256 = vst.msk [vmem:[%s1813_s9 + $0x38] sm:$0xff] %vm1248_vm5, %v1239_v60 }
 0x283   : > { %1257 = vst.msk [vmem:[%s1813_s9 + $0x40] sm:$0xff] %vm1248_vm5, %v1240_v31 }
 0x284   : > { %1258 = vst.msk [vmem:[%s1813_s9 + $0x48] sm:$0xff] %vm1248_vm5, %v1241_v50 }
 0x285   : > { %1259 = vst.msk [vmem:[%s1813_s9 + $0x50] sm:$0xff] %vm1248_vm5, %v1242_v37 }
 0x286   : > { %1260 = vst.msk [vmem:[%s1813_s9 + $0x58] sm:$0xff] %vm1248_vm5, %v1243_v47 }
 0x287   : > { %1261 = vst.msk [vmem:[%s1813_s9 + $0x60] sm:$0xff] %vm1248_vm5, %v1244_v59 }
 0x288   : > { %1262 = vst.msk [vmem:[%s1813_s9 + $0x68] sm:$0xff] %vm1248_vm5, %v1245_v41 }
 0x289   : > { %1263 = vst.msk [vmem:[%s1813_s9 + $0x70] sm:$0xff] %vm1248_vm5, %v1246_v8 }
 0x28a   : > { %1264 = vst.msk [vmem:[%s1813_s9 + $0x78] sm:$0xff] %vm1248_vm5, %v1247_v45 }
 0x28b PF: > { %s16_s22 = sadd.s32 1, %s1731_s22   ;;  %s2532_s18 = smov %s1723_s20 }
 0x28c   : > { %p13_p10 = scmp.ge.s32.totalorder %s16_s22, 6   ;;  %s2533_s19 = smov %s1727_s21 }
 0x28d   : > { %s2534_s20 = smov %s2537_s23  ;;  %s2535_s21 = smov %s2541_s24 }
 0x28e   :  { %15 = sbr.rel (!%p13_p10) target bundleno = 3 (0x3), region = 95 }

</bundles_post_ra>
